<compile_context>
chip_gen: v7x
topology: tpu7x:2x2x1
jax: 0.10.0
libtpu: 0.0.40
codegen_flags: <defaults>
</compile_context>

<pallas_src>
import math

import jax
import jax.numpy as jnp
from jax.experimental import pallas as pl
from jax.experimental.pallas import tpu as pltpu


def _pick_tile(n, max_tile):
    """Largest multiple of 128 that divides n and is <= max_tile, else n."""
    t = max_tile
    while t >= 128:
        if n % t == 0:
            return t
        t -= 128
    return n  # full-extent block (allowed even when not a multiple of 128)


# ----------------------------------------------------------------------------
# Fused q/k/v 1x1-conv projection kernel
# ----------------------------------------------------------------------------

def _qkv_kernel(x_ref, wq_ref, wk_ref, wv_ref, bq_ref, bk_ref, bv_ref,
                q_ref, k_ref, v_ref):
    xb = x_ref[0].astype(jnp.bfloat16)                      # (C, TN)

    def proj(w_ref, b_ref):
        y = jnp.dot(w_ref[...], xb, preferred_element_type=jnp.float32)
        return (y + b_ref[...]).astype(jnp.bfloat16)        # bias fused epilogue

    q_ref[0] = proj(wq_ref, bq_ref)                         # (Cq, TN)
    k_ref[0] = proj(wk_ref, bk_ref)                         # (Cq, TN)
    v_ref[0] = proj(wv_ref, bv_ref)                         # (C,  TN)


# ----------------------------------------------------------------------------
# Flash-style attention kernel (online softmax over kv tiles)
# ----------------------------------------------------------------------------

def _flash_attn_kernel(q_ref, k_ref, v_ref, x_ref, g_ref, o_ref,
                       m_sc, l_sc, acc_sc):
    ki = pl.program_id(2)

    @pl.when(ki == 0)
    def _():
        m_sc[...] = jnp.full_like(m_sc, -jnp.inf)
        l_sc[...] = jnp.zeros_like(l_sc)
        acc_sc[...] = jnp.zeros_like(acc_sc)

    q = q_ref[0]                                            # (Cq, TQ) bf16
    k = k_ref[0]                                            # (Cq, TK) bf16
    v = v_ref[0]                                            # (C,  TK) bf16

    # s[j, i] = energy[i, j] = sum_c q[c, i] * k[c, j]  -> (TK, TQ) fp32
    s = jax.lax.dot_general(k, q, (((0,), (0,)), ((), ())),
                            preferred_element_type=jnp.float32)

    m_prev = m_sc[...]                                      # (1, TQ)
    m_new = jnp.maximum(m_prev, jnp.max(s, axis=0, keepdims=True))
    alpha = jnp.exp(m_prev - m_new)                         # (1, TQ)
    p = jnp.exp(s - m_new)                                  # (TK, TQ)

    l_sc[...] = alpha * l_sc[...] + jnp.sum(p, axis=0, keepdims=True)
    acc_sc[...] = alpha * acc_sc[...] + jnp.dot(
        v, p.astype(jnp.bfloat16), preferred_element_type=jnp.float32)
    m_sc[...] = m_new

    @pl.when(ki == pl.num_programs(2) - 1)
    def _():
        inv_l = pl.reciprocal(l_sc[...], approx=True)       # (1, TQ) on the EUP
        # out = gamma * attention_out + x   (residual fused in epilogue)
        o_ref[0] = g_ref[0, 0] * (acc_sc[...] * inv_l) + x_ref[0]


# ----------------------------------------------------------------------------
# Module forward
# ----------------------------------------------------------------------------

def self_attn_forward(x, params):
    """x: (B, C, W, H, D) float32 -> (B, C, W, H, D) float32."""
    B, C, W, H, D = x.shape
    N = W * H * D
    Cq = params["wq"].shape[0]
    assert params["wq"].shape == (Cq, C) and C % 2 == 0 and Cq == C // 2

    xf = x.reshape(B, C, N).astype(jnp.float32)             # free view, N last

    # ---- fused q/k/v projection (1x1 convs + bias) ------------------------
    TN = _pick_tile(N, 512)
    const2d = lambda b, n: (0, 0)
    q, k, v = pl.pallas_call(
        _qkv_kernel,
        out_shape=(jax.ShapeDtypeStruct((B, Cq, N), jnp.bfloat16),
                   jax.ShapeDtypeStruct((B, Cq, N), jnp.bfloat16),
                   jax.ShapeDtypeStruct((B, C, N), jnp.bfloat16)),
        grid=(B, N // TN),
        in_specs=[pl.BlockSpec((1, C, TN), lambda b, n: (b, 0, n)),
                  pl.BlockSpec((Cq, C), const2d),
                  pl.BlockSpec((Cq, C), const2d),
                  pl.BlockSpec((C, C), const2d),
                  pl.BlockSpec((Cq, 1), const2d),
                  pl.BlockSpec((Cq, 1), const2d),
                  pl.BlockSpec((C, 1), const2d)],
        out_specs=(pl.BlockSpec((1, Cq, TN), lambda b, n: (b, 0, n)),
                   pl.BlockSpec((1, Cq, TN), lambda b, n: (b, 0, n)),
                   pl.BlockSpec((1, C, TN), lambda b, n: (b, 0, n))),
        compiler_params=pltpu.CompilerParams(
            dimension_semantics=("parallel", "parallel")),
    )(xf,
      params["wq"].astype(jnp.bfloat16),
      params["wk"].astype(jnp.bfloat16),
      params["wv"].astype(jnp.bfloat16),
      params["bq"].reshape(Cq, 1).astype(jnp.float32),
      params["bk"].reshape(Cq, 1).astype(jnp.float32),
      params["bv"].reshape(C, 1).astype(jnp.float32))

    # ---- flash attention + gamma-residual ---------------------------------
    TQ = _pick_tile(N, 256)
    TK = _pick_tile(N, 256)
    gamma = jnp.reshape(params["gamma"].astype(jnp.float32), (1, 1))

    out = pl.pallas_call(
        _flash_attn_kernel,
        out_shape=jax.ShapeDtypeStruct((B, C, N), jnp.float32),
        grid=(B, N // TQ, N // TK),
        in_specs=[pl.BlockSpec((1, Cq, TQ), lambda b, qi, ki: (b, 0, qi)),
                  pl.BlockSpec((1, Cq, TK), lambda b, qi, ki: (b, 0, ki)),
                  pl.BlockSpec((1, C, TK), lambda b, qi, ki: (b, 0, ki)),
                  pl.BlockSpec((1, C, TQ), lambda b, qi, ki: (b, 0, qi)),
                  pl.BlockSpec((1, 1), lambda b, qi, ki: (0, 0))],
        out_specs=pl.BlockSpec((1, C, TQ), lambda b, qi, ki: (b, 0, qi)),
        scratch_shapes=[pltpu.VMEM((1, TQ), jnp.float32),   # running max m
                        pltpu.VMEM((1, TQ), jnp.float32),   # running sum l
                        pltpu.VMEM((C, TQ), jnp.float32)],  # output accumulator
        compiler_params=pltpu.CompilerParams(
            dimension_semantics=("parallel", "parallel", "arbitrary")),
    )(q, k, v, xf, gamma)

    return out.reshape(B, C, W, H, D)


# ----------------------------------------------------------------------------
# Pure-JAX reference (for correctness check) and synthetic parameters
# ----------------------------------------------------------------------------

def self_attn_reference(x, params):
    B, C, W, H, D = x.shape
    N = W * H * D
    xf = x.reshape(B, C, N)
    q = jnp.einsum('oc,bcn->bon', params["wq"], xf) + params["bq"][None, :, None]
    k = jnp.einsum('oc,bcn->bon', params["wk"], xf) + params["bk"][None, :, None]
    v = jnp.einsum('oc,bcn->bon', params["wv"], xf) + params["bv"][None, :, None]
    energy = jnp.einsum('bci,bcj->bij', q, k)
    attn = jax.nn.softmax(energy, axis=-1)
    out = jnp.einsum('bcj,bij->bci', v, attn)
    out = params["gamma"] * out + xf
    return out.reshape(B, C, W, H, D)


def make_params(key, C):
    """Conv3d(kernel_size=1) weights as (Cout, Cin) matrices + biases."""
    Cq = C // 2
    ks = jax.random.split(key, 6)
    bound = 1.0 / math.sqrt(C)  # PyTorch default conv init scale (fan_in = C)

    def u(k, shape):
        return jax.random.uniform(k, shape, jnp.float32, -bound, bound)

    return {
        "wq": u(ks[0], (Cq, C)), "bq": u(ks[1], (Cq,)),
        "wk": u(ks[2], (Cq, C)), "bk": u(ks[3], (Cq,)),
        "wv": u(ks[4], (C, C)), "bv": u(ks[5], (C,)),
        # PyTorch initializes gamma to 0 (output == x); use a nonzero value in
        # this synthetic test so the attention path is actually exercised.
        "gamma": jnp.asarray(0.5, jnp.float32),
    }


if __name__ == "__main__":
    key = jax.random.PRNGKey(0)
    kx, kp = jax.random.split(key)

    # Small config: in_dim=32 channels, 8x8x8 volume -> N = 512, batch = 2.
    B, C, W, H, D = 2, 32, 8, 8, 8
    x = jax.random.normal(kx, (B, C, W, H, D), jnp.float32)
    params = make_params(kp, C)

    fwd = jax.jit(self_attn_forward)
    out = jax.block_until_ready(fwd(x, params))

    assert out.shape == (B, C, W, H, D), out.shape
    assert out.dtype == jnp.float32
    assert bool(jnp.all(jnp.isfinite(out)))

    # Tolerance accounts for bf16 MXU inputs and the approx EUP reciprocal.
    ref = self_attn_reference(x, params)
    max_err = float(jnp.max(jnp.abs(out - ref)))
    assert max_err < 7.5e-2, f"max abs error {max_err}"

    print("KERNEL_OK")
</pallas_src>

<mosaic_0001>
module attributes {stable_mosaic.version = 11 : i64} {
  func.func @_qkv_kernel(%arg0: i32, %arg1: i32, %arg2: memref<1x32x512xf32, #tpu.memory_space<vmem>>, %arg3: memref<16x32xbf16, #tpu.memory_space<vmem>>, %arg4: memref<16x32xbf16, #tpu.memory_space<vmem>>, %arg5: memref<32x32xbf16, #tpu.memory_space<vmem>>, %arg6: memref<16x1xf32, #tpu.memory_space<vmem>>, %arg7: memref<16x1xf32, #tpu.memory_space<vmem>>, %arg8: memref<32x1xf32, #tpu.memory_space<vmem>>, %arg9: memref<1x16x512xbf16, #tpu.memory_space<vmem>>, %arg10: memref<1x16x512xbf16, #tpu.memory_space<vmem>>, %arg11: memref<1x32x512xbf16, #tpu.memory_space<vmem>>) attributes {dimension_semantics = [#tpu.dimension_semantics<parallel>, #tpu.dimension_semantics<parallel>], iteration_bounds = array<i64: 2, 1>, scalar_prefetch = 0 : i64, scratch_operands = 0 : i64, tpu.core_type = #tpu.core_type<tc>, window_params = [{transform_indices = @transform_0, window_bounds = array<i64: 1, 32, 512>}, {pipeline_mode = #tpu.pipeline_mode<synchronous>, transform_indices = @transform_1, window_bounds = array<i64: 16, 32>}, {pipeline_mode = #tpu.pipeline_mode<synchronous>, transform_indices = @transform_2, window_bounds = array<i64: 16, 32>}, {pipeline_mode = #tpu.pipeline_mode<synchronous>, transform_indices = @transform_3, window_bounds = array<i64: 32, 32>}, {pipeline_mode = #tpu.pipeline_mode<synchronous>, transform_indices = @transform_4, window_bounds = array<i64: 16, 1>}, {pipeline_mode = #tpu.pipeline_mode<synchronous>, transform_indices = @transform_5, window_bounds = array<i64: 16, 1>}, {pipeline_mode = #tpu.pipeline_mode<synchronous>, transform_indices = @transform_6, window_bounds = array<i64: 32, 1>}, {transform_indices = @transform_7, window_bounds = array<i64: 1, 16, 512>}, {transform_indices = @transform_8, window_bounds = array<i64: 1, 16, 512>}, {transform_indices = @transform_9, window_bounds = array<i64: 1, 32, 512>}]} {
    %c0 = arith.constant 0 : index
    %c0_0 = arith.constant 0 : index
    %c0_1 = arith.constant 0 : index
    %0 = vector.load %arg2[%c0, %c0_0, %c0_1] : memref<1x32x512xf32, #tpu.memory_space<vmem>>, vector<1x32x512xf32>
    %1 = vector.shape_cast %0 : vector<1x32x512xf32> to vector<32x512xf32>
    %2 = arith.truncf %1 : vector<32x512xf32> to vector<32x512xbf16>
    %c0_2 = arith.constant 0 : index
    %c0_3 = arith.constant 0 : index
    %3 = vector.load %arg3[%c0_2, %c0_3] : memref<16x32xbf16, #tpu.memory_space<vmem>>, vector<16x32xbf16>
    %cst = arith.constant dense<0.000000e+00> : vector<16x512xf32>
    %4 = tpu.matmul %3, %2, %cst {dimension_numbers = #tpu.dot_dimension_numbers<[1], [0], [0], [1], [0, 0, 1, 1], [], []>} : vector<16x32xbf16>, vector<32x512xbf16>, vector<16x512xf32> -> vector<16x512xf32>
    %c0_4 = arith.constant 0 : index
    %c0_5 = arith.constant 0 : index
    %5 = vector.load %arg6[%c0_4, %c0_5] : memref<16x1xf32, #tpu.memory_space<vmem>>, vector<16x1xf32>
    %6 = vector.broadcast %5 : vector<16x1xf32> to vector<16x512xf32>
    %7 = arith.addf %4, %6 : vector<16x512xf32>
    %8 = arith.truncf %7 : vector<16x512xf32> to vector<16x512xbf16>
    %c0_6 = arith.constant 0 : index
    %c0_7 = arith.constant 0 : index
    %c0_8 = arith.constant 0 : index
    %9 = vector.load %arg9[%c0_6, %c0_7, %c0_8] : memref<1x16x512xbf16, #tpu.memory_space<vmem>>, vector<1x16x512xbf16>
    %10 = vector.shape_cast %9 : vector<1x16x512xbf16> to vector<16x512xbf16>
    %11 = vector.shape_cast %8 : vector<16x512xbf16> to vector<1x16x512xbf16>
    tpu.vector_store %arg9[%c0_6, %c0_7, %c0_8], %11 {strides = array<i32>} : memref<1x16x512xbf16, #tpu.memory_space<vmem>>, vector<1x16x512xbf16>,
    %c0_9 = arith.constant 0 : index
    %c0_10 = arith.constant 0 : index
    %12 = vector.load %arg4[%c0_9, %c0_10] : memref<16x32xbf16, #tpu.memory_space<vmem>>, vector<16x32xbf16>
    %cst_11 = arith.constant dense<0.000000e+00> : vector<16x512xf32>
    %13 = tpu.matmul %12, %2, %cst_11 {dimension_numbers = #tpu.dot_dimension_numbers<[1], [0], [0], [1], [0, 0, 1, 1], [], []>} : vector<16x32xbf16>, vector<32x512xbf16>, vector<16x512xf32> -> vector<16x512xf32>
    %c0_12 = arith.constant 0 : index
    %c0_13 = arith.constant 0 : index
    %14 = vector.load %arg7[%c0_12, %c0_13] : memref<16x1xf32, #tpu.memory_space<vmem>>, vector<16x1xf32>
    %15 = vector.broadcast %14 : vector<16x1xf32> to vector<16x512xf32>
    %16 = arith.addf %13, %15 : vector<16x512xf32>
    %17 = arith.truncf %16 : vector<16x512xf32> to vector<16x512xbf16>
    %c0_14 = arith.constant 0 : index
    %c0_15 = arith.constant 0 : index
    %c0_16 = arith.constant 0 : index
    %18 = vector.load %arg10[%c0_14, %c0_15, %c0_16] : memref<1x16x512xbf16, #tpu.memory_space<vmem>>, vector<1x16x512xbf16>
    %19 = vector.shape_cast %18 : vector<1x16x512xbf16> to vector<16x512xbf16>
    %20 = vector.shape_cast %17 : vector<16x512xbf16> to vector<1x16x512xbf16>
    tpu.vector_store %arg10[%c0_14, %c0_15, %c0_16], %20 {strides = array<i32>} : memref<1x16x512xbf16, #tpu.memory_space<vmem>>, vector<1x16x512xbf16>,
    %c0_17 = arith.constant 0 : index
    %c0_18 = arith.constant 0 : index
    %21 = vector.load %arg5[%c0_17, %c0_18] : memref<32x32xbf16, #tpu.memory_space<vmem>>, vector<32x32xbf16>
    %cst_19 = arith.constant dense<0.000000e+00> : vector<32x512xf32>
    %22 = tpu.matmul %21, %2, %cst_19 {dimension_numbers = #tpu.dot_dimension_numbers<[1], [0], [0], [1], [0, 0, 1, 1], [], []>} : vector<32x32xbf16>, vector<32x512xbf16>, vector<32x512xf32> -> vector<32x512xf32>
    %c0_20 = arith.constant 0 : index
    %c0_21 = arith.constant 0 : index
    %23 = vector.load %arg8[%c0_20, %c0_21] : memref<32x1xf32, #tpu.memory_space<vmem>>, vector<32x1xf32>
    %24 = vector.broadcast %23 : vector<32x1xf32> to vector<32x512xf32>
    %25 = arith.addf %22, %24 : vector<32x512xf32>
    %26 = arith.truncf %25 : vector<32x512xf32> to vector<32x512xbf16>
    %c0_22 = arith.constant 0 : index
    %c0_23 = arith.constant 0 : index
    %c0_24 = arith.constant 0 : index
    %27 = vector.load %arg11[%c0_22, %c0_23, %c0_24] : memref<1x32x512xbf16, #tpu.memory_space<vmem>>, vector<1x32x512xbf16>
    %28 = vector.shape_cast %27 : vector<1x32x512xbf16> to vector<32x512xbf16>
    %29 = vector.shape_cast %26 : vector<32x512xbf16> to vector<1x32x512xbf16>
    tpu.vector_store %arg11[%c0_22, %c0_23, %c0_24], %29 {strides = array<i32>} : memref<1x32x512xbf16, #tpu.memory_space<vmem>>, vector<1x32x512xbf16>,
    return
  }
  func.func @transform_0(%arg0: i32, %arg1: i32) -> (i32, i32, i32) {
    %c0_i32 = arith.constant 0 : i32
    %c0_i32_0 = arith.constant 0 : i32
    return %arg0, %c0_i32, %arg1 : i32, i32, i32
  }
  func.func @transform_1(%arg0: i32, %arg1: i32) -> (i32, i32) {
    %c0_i32 = arith.constant 0 : i32
    %c0_i32_0 = arith.constant 0 : i32
    %c0_i32_1 = arith.constant 0 : i32
    return %c0_i32, %c0_i32_0 : i32, i32
  }
  func.func @transform_2(%arg0: i32, %arg1: i32) -> (i32, i32) {
    %c0_i32 = arith.constant 0 : i32
    %c0_i32_0 = arith.constant 0 : i32
    %c0_i32_1 = arith.constant 0 : i32
    return %c0_i32, %c0_i32_0 : i32, i32
  }
  func.func @transform_3(%arg0: i32, %arg1: i32) -> (i32, i32) {
    %c0_i32 = arith.constant 0 : i32
    %c0_i32_0 = arith.constant 0 : i32
    %c0_i32_1 = arith.constant 0 : i32
    return %c0_i32, %c0_i32_0 : i32, i32
  }
  func.func @transform_4(%arg0: i32, %arg1: i32) -> (i32, i32) {
    %c0_i32 = arith.constant 0 : i32
    %c0_i32_0 = arith.constant 0 : i32
    %c0_i32_1 = arith.constant 0 : i32
    return %c0_i32, %c0_i32_0 : i32, i32
  }
  func.func @transform_5(%arg0: i32, %arg1: i32) -> (i32, i32) {
    %c0_i32 = arith.constant 0 : i32
    %c0_i32_0 = arith.constant 0 : i32
    %c0_i32_1 = arith.constant 0 : i32
    return %c0_i32, %c0_i32_0 : i32, i32
  }
  func.func @transform_6(%arg0: i32, %arg1: i32) -> (i32, i32) {
    %c0_i32 = arith.constant 0 : i32
    %c0_i32_0 = arith.constant 0 : i32
    %c0_i32_1 = arith.constant 0 : i32
    return %c0_i32, %c0_i32_0 : i32, i32
  }
  func.func @transform_7(%arg0: i32, %arg1: i32) -> (i32, i32, i32) {
    %c0_i32 = arith.constant 0 : i32
    %c0_i32_0 = arith.constant 0 : i32
    return %arg0, %c0_i32, %arg1 : i32, i32, i32
  }
  func.func @transform_8(%arg0: i32, %arg1: i32) -> (i32, i32, i32) {
    %c0_i32 = arith.constant 0 : i32
    %c0_i32_0 = arith.constant 0 : i32
    return %arg0, %c0_i32, %arg1 : i32, i32, i32
  }
  func.func @transform_9(%arg0: i32, %arg1: i32) -> (i32, i32, i32) {
    %c0_i32 = arith.constant 0 : i32
    %c0_i32_0 = arith.constant 0 : i32
    return %arg0, %c0_i32, %arg1 : i32, i32, i32
  }
}

module attributes {stable_mosaic.version = 11 : i64} {
  func.func @_flash_attn_kernel(%arg0: i32, %arg1: i32, %arg2: i32, %arg3: memref<1x16x256xbf16, #tpu.memory_space<vmem>>, %arg4: memref<1x16x256xbf16, #tpu.memory_space<vmem>>, %arg5: memref<1x32x256xbf16, #tpu.memory_space<vmem>>, %arg6: memref<1x32x256xf32, #tpu.memory_space<vmem>>, %arg7: memref<1x1xf32, #tpu.memory_space<vmem>>, %arg8: memref<1x32x256xf32, #tpu.memory_space<vmem>>, %arg9: memref<1x256xf32, #tpu.memory_space<vmem>>, %arg10: memref<1x256xf32, #tpu.memory_space<vmem>>, %arg11: memref<32x256xf32, #tpu.memory_space<vmem>>) attributes {dimension_semantics = [#tpu.dimension_semantics<parallel>, #tpu.dimension_semantics<parallel>, #tpu.dimension_semantics<arbitrary>], iteration_bounds = array<i64: 2, 2, 2>, scalar_prefetch = 0 : i64, scratch_operands = 3 : i64, tpu.core_type = #tpu.core_type<tc>, window_params = [{transform_indices = @transform_0, window_bounds = array<i64: 1, 16, 256>}, {transform_indices = @transform_1, window_bounds = array<i64: 1, 16, 256>}, {transform_indices = @transform_2, window_bounds = array<i64: 1, 32, 256>}, {transform_indices = @transform_3, window_bounds = array<i64: 1, 32, 256>}, {pipeline_mode = #tpu.pipeline_mode<synchronous>, transform_indices = @transform_4, window_bounds = array<i64: 1, 1>}, {transform_indices = @transform_5, window_bounds = array<i64: 1, 32, 256>}]} {
    %c0_i32 = arith.constant 0 : i32
    %0 = arith.cmpi eq, %arg2, %c0_i32 : i32
    %1 = arith.extui %0 : i1 to i32
    %c0_i32_0 = arith.constant 0 : i32
    %2 = arith.cmpi ne, %1, %c0_i32_0 : i32
    scf.if %2 {
      %cst_25 = arith.constant 0xFF800000 : f32
      %36 = vector.broadcast %cst_25 : f32 to vector<1x256xf32>
      %c0_26 = arith.constant 0 : index
      %c0_27 = arith.constant 0 : index
      %37 = vector.load %arg9[%c0_26, %c0_27] : memref<1x256xf32, #tpu.memory_space<vmem>>, vector<1x256xf32>
      tpu.vector_store %arg9[%c0_26, %c0_27], %36 {strides = array<i32>} : memref<1x256xf32, #tpu.memory_space<vmem>>, vector<1x256xf32>,
      %cst_28 = arith.constant 0.000000e+00 : f32
      %38 = vector.broadcast %cst_28 : f32 to vector<1x256xf32>
      %c0_29 = arith.constant 0 : index
      %c0_30 = arith.constant 0 : index
      %39 = vector.load %arg10[%c0_29, %c0_30] : memref<1x256xf32, #tpu.memory_space<vmem>>, vector<1x256xf32>
      tpu.vector_store %arg10[%c0_29, %c0_30], %38 {strides = array<i32>} : memref<1x256xf32, #tpu.memory_space<vmem>>, vector<1x256xf32>,
      %cst_31 = arith.constant 0.000000e+00 : f32
      %40 = vector.broadcast %cst_31 : f32 to vector<32x256xf32>
      %c0_32 = arith.constant 0 : index
      %c0_33 = arith.constant 0 : index
      %41 = vector.load %arg11[%c0_32, %c0_33] : memref<32x256xf32, #tpu.memory_space<vmem>>, vector<32x256xf32>
      tpu.vector_store %arg11[%c0_32, %c0_33], %40 {strides = array<i32>} : memref<32x256xf32, #tpu.memory_space<vmem>>, vector<32x256xf32>,
    } else {
    }
    %c0 = arith.constant 0 : index
    %c0_1 = arith.constant 0 : index
    %c0_2 = arith.constant 0 : index
    %3 = vector.load %arg3[%c0, %c0_1, %c0_2] : memref<1x16x256xbf16, #tpu.memory_space<vmem>>, vector<1x16x256xbf16>
    %4 = vector.shape_cast %3 : vector<1x16x256xbf16> to vector<16x256xbf16>
    %c0_3 = arith.constant 0 : index
    %c0_4 = arith.constant 0 : index
    %c0_5 = arith.constant 0 : index
    %5 = vector.load %arg4[%c0_3, %c0_4, %c0_5] : memref<1x16x256xbf16, #tpu.memory_space<vmem>>, vector<1x16x256xbf16>
    %6 = vector.shape_cast %5 : vector<1x16x256xbf16> to vector<16x256xbf16>
    %c0_6 = arith.constant 0 : index
    %c0_7 = arith.constant 0 : index
    %c0_8 = arith.constant 0 : index
    %7 = vector.load %arg5[%c0_6, %c0_7, %c0_8] : memref<1x32x256xbf16, #tpu.memory_space<vmem>>, vector<1x32x256xbf16>
    %8 = vector.shape_cast %7 : vector<1x32x256xbf16> to vector<32x256xbf16>
    %cst = arith.constant dense<0.000000e+00> : vector<256x256xf32>
    %9 = tpu.matmul %6, %4, %cst {dimension_numbers = #tpu.dot_dimension_numbers<[0], [0], [1], [1], [0, 1, 1, 1], [], []>} : vector<16x256xbf16>, vector<16x256xbf16>, vector<256x256xf32> -> vector<256x256xf32>
    %c0_9 = arith.constant 0 : index
    %c0_10 = arith.constant 0 : index
    %10 = vector.load %arg9[%c0_9, %c0_10] : memref<1x256xf32, #tpu.memory_space<vmem>>, vector<1x256xf32>
    %cst_11 = arith.constant dense<0xFF800000> : vector<256xf32>
    %11 = vector.multi_reduction <maximumf>, %9, %cst_11 [0] : vector<256x256xf32> to vector<256xf32>
    %12 = vector.shape_cast %11 : vector<256xf32> to vector<1x256xf32>
    %13 = arith.maximumf %10, %12 : vector<1x256xf32>
    %14 = arith.subf %10, %13 : vector<1x256xf32>
    %15 = math.exp %14 : vector<1x256xf32>
    %16 = vector.broadcast %13 : vector<1x256xf32> to vector<256x256xf32>
    %17 = arith.subf %9, %16 : vector<256x256xf32>
    %18 = math.exp %17 : vector<256x256xf32>
    %c0_12 = arith.constant 0 : index
    %c0_13 = arith.constant 0 : index
    %19 = vector.load %arg10[%c0_12, %c0_13] : memref<1x256xf32, #tpu.memory_space<vmem>>, vector<1x256xf32>
    %20 = arith.mulf %15, %19 : vector<1x256xf32>
    %cst_14 = arith.constant dense<0.000000e+00> : vector<256xf32>
    %21 = vector.multi_reduction <add>, %18, %cst_14 [0] : vector<256x256xf32> to vector<256xf32>
    %22 = vector.shape_cast %21 : vector<256xf32> to vector<1x256xf32>
    %23 = arith.addf %20, %22 : vector<1x256xf32>
    %c0_15 = arith.constant 0 : index
    %c0_16 = arith.constant 0 : index
    %24 = vector.load %arg10[%c0_15, %c0_16] : memref<1x256xf32, #tpu.memory_space<vmem>>, vector<1x256xf32>
    tpu.vector_store %arg10[%c0_15, %c0_16], %23 {strides = array<i32>} : memref<1x256xf32, #tpu.memory_space<vmem>>, vector<1x256xf32>,
    %c0_17 = arith.constant 0 : index
    %c0_18 = arith.constant 0 : index
    %25 = vector.load %arg11[%c0_17, %c0_18] : memref<32x256xf32, #tpu.memory_space<vmem>>, vector<32x256xf32>
    %26 = vector.broadcast %15 : vector<1x256xf32> to vector<32x256xf32>
    %27 = arith.mulf %26, %25 : vector<32x256xf32>
    %28 = arith.truncf %18 : vector<256x256xf32> to vector<256x256xbf16>
    %cst_19 = arith.constant dense<0.000000e+00> : vector<32x256xf32>
    %29 = tpu.matmul %8, %28, %cst_19 {dimension_numbers = #tpu.dot_dimension_numbers<[1], [0], [0], [1], [0, 0, 1, 1], [], []>} : vector<32x256xbf16>, vector<256x256xbf16>, vector<32x256xf32> -> vector<32x256xf32>
    %30 = arith.addf %27, %29 : vector<32x256xf32>
    %c0_20 = arith.constant 0 : index
    %c0_21 = arith.constant 0 : index
    %31 = vector.load %arg11[%c0_20, %c0_21] : memref<32x256xf32, #tpu.memory_space<vmem>>, vector<32x256xf32>
    tpu.vector_store %arg11[%c0_20, %c0_21], %30 {strides = array<i32>} : memref<32x256xf32, #tpu.memory_space<vmem>>, vector<32x256xf32>,
    %c0_22 = arith.constant 0 : index
    %c0_23 = arith.constant 0 : index
    %32 = vector.load %arg9[%c0_22, %c0_23] : memref<1x256xf32, #tpu.memory_space<vmem>>, vector<1x256xf32>
    tpu.vector_store %arg9[%c0_22, %c0_23], %13 {strides = array<i32>} : memref<1x256xf32, #tpu.memory_space<vmem>>, vector<1x256xf32>,
    %c1_i32 = arith.constant 1 : i32
    %33 = arith.cmpi eq, %arg2, %c1_i32 : i32
    %34 = arith.extui %33 : i1 to i32
    %c0_i32_24 = arith.constant 0 : i32
    %35 = arith.cmpi ne, %34, %c0_i32_24 : i32
    scf.if %35 {
      %c0_25 = arith.constant 0 : index
      %c0_26 = arith.constant 0 : index
      %36 = vector.load %arg10[%c0_25, %c0_26] : memref<1x256xf32, #tpu.memory_space<vmem>>, vector<1x256xf32>
      %37 = tpu.reciprocal %36 {approx = true} : vector<1x256xf32> -> vector<1x256xf32>
      %c0_27 = arith.constant 0 : index
      %c0_28 = arith.constant 0 : index
      %38 = vector.load %arg7[%c0_27, %c0_28] : memref<1x1xf32, #tpu.memory_space<vmem>>, vector<1x1xf32>
      %39 = vector.extract %38[0, 0] : f32 from vector<1x1xf32>
      %c0_29 = arith.constant 0 : index
      %c0_30 = arith.constant 0 : index
      %40 = vector.load %arg11[%c0_29, %c0_30] : memref<32x256xf32, #tpu.memory_space<vmem>>, vector<32x256xf32>
      %41 = vector.broadcast %37 : vector<1x256xf32> to vector<32x256xf32>
      %42 = arith.mulf %40, %41 : vector<32x256xf32>
      %43 = vector.broadcast %39 : f32 to vector<32x256xf32>
      %44 = arith.mulf %43, %42 : vector<32x256xf32>
      %c0_31 = arith.constant 0 : index
      %c0_32 = arith.constant 0 : index
      %c0_33 = arith.constant 0 : index
      %45 = vector.load %arg6[%c0_31, %c0_32, %c0_33] : memref<1x32x256xf32, #tpu.memory_space<vmem>>, vector<1x32x256xf32>
      %46 = vector.shape_cast %45 : vector<1x32x256xf32> to vector<32x256xf32>
      %47 = arith.addf %44, %46 : vector<32x256xf32>
      %c0_34 = arith.constant 0 : index
      %c0_35 = arith.constant 0 : index
      %c0_36 = arith.constant 0 : index
      %48 = vector.load %arg8[%c0_34, %c0_35, %c0_36] : memref<1x32x256xf32, #tpu.memory_space<vmem>>, vector<1x32x256xf32>
      %49 = vector.shape_cast %48 : vector<1x32x256xf32> to vector<32x256xf32>
      %50 = vector.shape_cast %47 : vector<32x256xf32> to vector<1x32x256xf32>
      tpu.vector_store %arg8[%c0_34, %c0_35, %c0_36], %50 {strides = array<i32>} : memref<1x32x256xf32, #tpu.memory_space<vmem>>, vector<1x32x256xf32>,
    } else {
    }
    return
  }
  func.func @transform_0(%arg0: i32, %arg1: i32, %arg2: i32) -> (i32, i32, i32) {
    %c0_i32 = arith.constant 0 : i32
    %c0_i32_0 = arith.constant 0 : i32
    return %arg0, %c0_i32, %arg1 : i32, i32, i32
  }
  func.func @transform_1(%arg0: i32, %arg1: i32, %arg2: i32) -> (i32, i32, i32) {
    %c0_i32 = arith.constant 0 : i32
    %c0_i32_0 = arith.constant 0 : i32
    return %arg0, %c0_i32, %arg2 : i32, i32, i32
  }
  func.func @transform_2(%arg0: i32, %arg1: i32, %arg2: i32) -> (i32, i32, i32) {
    %c0_i32 = arith.constant 0 : i32
    %c0_i32_0 = arith.constant 0 : i32
    return %arg0, %c0_i32, %arg2 : i32, i32, i32
  }
  func.func @transform_3(%arg0: i32, %arg1: i32, %arg2: i32) -> (i32, i32, i32) {
    %c0_i32 = arith.constant 0 : i32
    %c0_i32_0 = arith.constant 0 : i32
    return %arg0, %c0_i32, %arg1 : i32, i32, i32
  }
  func.func @transform_4(%arg0: i32, %arg1: i32, %arg2: i32) -> (i32, i32) {
    %c0_i32 = arith.constant 0 : i32
    %c0_i32_0 = arith.constant 0 : i32
    %c0_i32_1 = arith.constant 0 : i32
    return %c0_i32, %c0_i32_0 : i32, i32
  }
  func.func @transform_5(%arg0: i32, %arg1: i32, %arg2: i32) -> (i32, i32, i32) {
    %c0_i32 = arith.constant 0 : i32
    %c0_i32_0 = arith.constant 0 : i32
    return %arg0, %c0_i32, %arg1 : i32, i32, i32
  }
}

</mosaic_0001>

<bundles_post_ra>
// kernel: self_attn_forward.2
= control target key start
LH: loop header
LB: loop body
LE: loop exit
PB: predicated region body
PF: predicated region fallthrough
CT: control target
= control target key end

     0   :  { %s1279_s30 = smov 0   ;;  %s1281_s10 = smov 0   ;;  %s1409_s0 = inlined_call_operand.vmem [shape: f32[2,32,512], index: 0, kind: input, shape index: {}]   ;;  %s1410_s1 = inlined_call_operand.vmem [shape: bf16[16,32], index: 1, kind: input, shape index: {}]   ;;  %s1411_s2 = inlined_call_operand.vmem [shape: bf16[16,32], index: 2, kind: input, shape index: {}]   ;;  %s1412_s3 = inlined_call_operand.vmem [shape: bf16[32,32], index: 3, kind: input, shape index: {}]   ;;  %s1413_s4 = inlined_call_operand.vmem [shape: f32[16,1], index: 4, kind: input, shape index: {}]   ;;  %s1414_s5 = inlined_call_operand.vmem [shape: f32[16,1], index: 5, kind: input, shape index: {}]   ;;  %s1415_s6 = inlined_call_operand.vmem [shape: f32[32,1], index: 6, kind: input, shape index: {}]   ;;  %s1416_s7 = inlined_call_operand.vmem [shape: bf16[2,16,512], index: 7, kind: output, shape index: {0}]   ;;  %s1417_s8 = inlined_call_operand.vmem [shape: bf16[2,16,512], index: 8, kind: output, shape index: {1}]   ;;  %s1418_s9 = inlined_call_operand.vmem [shape: bf16[2,32,512], index: 9, kind: output, shape index: {2}]  }
   0x1   :  { %s1283_s11 = smov 0  }
   0x2 LB: > { %s32_s12 = sadd.s32 1, %s1222_s10  ;;  %p1114_p0 = scmp.ge.s32.totalorder %s1226_s11, 1  ;;  %s1226_s11 = sphi %s1283_s11, %s20_s11   ;;  %s1222_s10 = sphi %s1281_s10, %s1420_s10   ;;  %s1218_s30 = sphi %s1279_s30, %s1419_s30  }
   0x3   : > { %p34_p1 = scmp.ge.s32.totalorder %s32_s12, 2  ;;  %p317_p2 = scmp.lt.s32.totalorder %s1226_s11, 3 }
   0x5   : > { %s1422_s12 = smov (%p34_p1, %s32_s12), 0  ;;  %p318_p3 = pnand %p1114_p0, %p317_p2 }
   0x6   : > { %p380_p4 = scmp.lt.s32.totalorder (!%p318_p3), %s1218_s30, 1  ;;  %v1228_v0 = vmov (!%p318_p3), 0   ;;  %v446_v1 = vld [vmem:[%s1413_s4] sm:$0xff] (!%p318_p3)  ;;  %v447_v2 = vld [vmem:[%s1413_s4 + $0x8] sm:$0xff] (!%p318_p3)  ;;  %vm463_vm0 = vcmask (!%p318_p3), 261120   ;;  %v723_v32 = vld [vmem:[%s1415_s6 + $0x10] sm:$0xff] (!%p318_p3) }
   0x7   : > { %321 = sbr.rel (%p318_p3) target bundleno = 274 (0x112), region = 48  ;;  %499 = vmatprep.mubr.bf16.mxu0 (!%p318_p3), %v1228_v0  ;;  %542 = vmatprep.mubr.bf16.mxu1 (!%p318_p3), %v1228_v0  ;;  %v583_v3 = vld [vmem:[%s1414_s5] sm:$0xff] (!%p318_p3)  ;;  %v584_v7 = vld [vmem:[%s1414_s5 + $0x8] sm:$0xff] (!%p318_p3)  ;;  %v724_v33 = vld [vmem:[%s1415_s6 + $0x18] sm:$0xff] (!%p318_p3) }
   0x8   : > { %1198 = vset.pattern.permute.xlu0 (!%p318_p3), %v1228_v0  ;;  %1199 = vset.pattern.permute.xlu1 (!%p318_p3), %v1228_v0  ;;  %v721_v28 = vld [vmem:[%s1415_s6] sm:$0xff] (!%p318_p3)  ;;  %v722_v31 = vld [vmem:[%s1415_s6 + $0x8] sm:$0xff] (!%p318_p3) }
   0x9   : > { %450 = vperm.xlu0 (!%p318_p3), %1198, %v446_v1   ;;  %587 = vperm.xlu1 (!%p318_p3), %1199, %v583_v3   ;;  %v1200_v30 = vld [vmem:[%s1410_s1] sm:$0xff] (!%p318_p3)   ;;  %v1203_v36 = vld [vmem:[%s1412_s3 + $0x8] sm:$0xff] (!%p318_p3)  }
   0xa   : > { %v1201_v34 = vld [vmem:[%s1411_s2] sm:$0xff] (!%p318_p3)  }
   0xb   : > { %v1202_v35 = vld [vmem:[%s1412_s3] sm:$0xff] (!%p318_p3)  }
   0xd   : > { %455 = vperm.xlu0 (!%p318_p3), %1198, %v447_v2   ;;  %592 = vperm.xlu1 (!%p318_p3), %1199, %v584_v7  }
   0xe   : > { %s1424_s30 = smov (!%p380_p4, %s1218_s30), 1 }
   0xf   : > { %s1153_s13 = sshll.u32 %s1424_s30, 7  ;;  %s1154_s24 = sshll.u32 %s1424_s30, 5 }
  0x10   : > { %s1310_s18 = scalar_lea.vmem %s1409_s0, %s1153_s13  ;;  %s397_s27 = scalar_lea.vmem %s1416_s7, %s1154_s24 }
  0x11   : > { %v421_v4 = vld [vmem:[%s1310_s18 + $0x8] sm:$0xff]  ;;  %v423_v6 = vld [vmem:[%s1310_s18 + $0x18] sm:$0xff]  ;;  %v420_v10 = vld [vmem:[%s1310_s18] sm:$0xff]  ;;  %727 = vperm.xlu0 %1198, %v721_v28   ;;  %732 = vperm.xlu1 %1199, %v722_v31   ;;  %s407_s13 = scalar_lea.vmem %s1417_s8, %s1154_s24  ;;  %s1156_s14 = sshll.u32 %s1424_s30, 6 }
  0x12   : > { %v425_v5 = vld [vmem:[%s1310_s18 + $0x28] sm:$0xff]  ;;  %v427_v9 = vld [vmem:[%s1310_s18 + $0x38] sm:$0xff]  ;;  %v424_v11 = vld [vmem:[%s1310_s18 + $0x20] sm:$0xff]  ;;  %s1390_s17 = scalar_lea.vmem %s1418_s9, %s1156_s14 }
  0x13   : > { %v437_v8 = vpack.c.bf16 %v425_v5, %v421_v4  ;;  %v439_v12 = vpack.c.bf16 %v427_v9, %v423_v6  ;;  %v436_v13 = vpack.c.bf16 %v424_v11, %v420_v10  ;;  %v422_v14 = vld [vmem:[%s1310_s18 + $0x10] sm:$0xff]  ;;  %v429_v16 = vld [vmem:[%s1310_s18 + $0x48] sm:$0xff]  ;;  %v431_v19 = vld [vmem:[%s1310_s18 + $0x58] sm:$0xff] }
  0x14   : > { %v426_v15 = vld [vmem:[%s1310_s18 + $0x30] sm:$0xff]  ;;  %v433_v18 = vld [vmem:[%s1310_s18 + $0x68] sm:$0xff]  ;;  %v435_v20 = vld [vmem:[%s1310_s18 + $0x78] sm:$0xff] }
  0x15   : > { %467 = vmatprep.subr.bf16.mxu0 %v437_v8  ;;  %v438_v17 = vpack.c.bf16 %v426_v15, %v422_v14  ;;  %510 = vmatprep.subr.bf16.mxu1 %v439_v12  ;;  %v441_v21 = vpack.c.bf16 %v433_v18, %v429_v16  ;;  %v443_v22 = vpack.c.bf16 %v435_v20, %v431_v19  ;;  %v428_v23 = vld [vmem:[%s1310_s18 + $0x40] sm:$0xff]  ;;  %v430_v25 = vld [vmem:[%s1310_s18 + $0x50] sm:$0xff] }
  0x16   : > { %468 = vmatpush1.bf16.msra.mxu0 %v436_v13  ;;  %v432_v24 = vld [vmem:[%s1310_s18 + $0x60] sm:$0xff]  ;;  %v434_v27 = vld [vmem:[%s1310_s18 + $0x70] sm:$0xff]  ;;  %737 = vperm.xlu0 %1198, %v723_v32  }
  0x17   : > { %511 = vmatpush1.bf16.msra.mxu1 %v438_v17  ;;  %v440_v26 = vpack.c.bf16 %v432_v24, %v428_v23  ;;  %469 = vmatprep.subr.bf16.mxu0 %v441_v21  ;;  %v442_v29 = vpack.c.bf16 %v434_v27, %v430_v25 }
  0x18   : > { %512 = vmatprep.subr.bf16.mxu1 %v443_v22  ;;  %742 = vperm.xlu1 %1199, %v724_v33  }
  0x1a   : > { %470 = vmatpush1.bf16.msra.mxu0 %v440_v26 }
  0x1b   : > { %513 = vmatpush1.bf16.msra.mxu1 %v442_v29  ;;  %603 = vmatprep.subr.bf16.mxu0 %v437_v8 }
  0x1c   : > { %646 = vmatprep.subr.bf16.mxu1 %v439_v12 }
  0x1d   : > { %1124 = vmatmul.mubr.msk.bf16.vlgmr.msra.gmra.mrb[0].mxu0 %vm463_vm0, %v1200_v30 }
  0x1e   : > { %1125 = vmatmul.mubr.msk.bf16.vlgmr.msra.gmra.mrb[0].mxu1 %vm463_vm0, %v1200_v30  ;;  %604 = vmatpush1.bf16.msra.mxu0 %v436_v13 }
  0x1f   : > { %647 = vmatpush1.bf16.msra.mxu1 %v438_v17  ;;  %605 = vmatprep.subr.bf16.mxu0 %v441_v21 }
  0x20   : > { %648 = vmatprep.subr.bf16.mxu1 %v443_v22  ;;  %635 = vmatprep.mubr.bf16.mxu0 %v1228_v0 }
  0x21   : > { %678 = vmatprep.mubr.bf16.mxu1 %v1228_v0 }
  0x22   : > { %606 = vmatpush1.bf16.msra.mxu0 %v440_v26 }
  0x23   : > { %649 = vmatpush1.bf16.msra.mxu1 %v442_v29  ;;  %761 = vmatprep.subr.bf16.mxu0 %v437_v8 }
  0x24   : > { %814 = vmatprep.subr.bf16.mxu1 %v439_v12 }
  0x25   : > { %1131 = vmatmul.mubr.msk.bf16.vlgmr.msra.gmra.mrb[4].mxu0 %vm463_vm0, %v1201_v34 }
  0x26   : > { %1132 = vmatmul.mubr.msk.bf16.vlgmr.msra.gmra.mrb[4].mxu1 %vm463_vm0, %v1201_v34  ;;  %762 = vmatpush1.bf16.msra.mxu0 %v436_v13 }
  0x27   : > { %815 = vmatpush1.bf16.msra.mxu1 %v438_v17  ;;  %763 = vmatprep.subr.bf16.mxu0 %v441_v21 }
  0x28   : > { %816 = vmatprep.subr.bf16.mxu1 %v443_v22  ;;  %793 = vmatprep.mubr.bf16.mxu0 %v1228_v0 }
  0x29   : > { %846 = vmatprep.mubr.bf16.mxu1 %v1228_v0 }
  0x2a   : > { %764 = vmatpush1.bf16.msra.mxu0 %v440_v26 }
  0x2b   : > { %817 = vmatpush1.bf16.msra.mxu1 %v442_v29 }
  0x2d   : > { %1139 = vmatmul.mubr.msk.bf16.vlgmr.msra.gmra.mrb[8].mxu0 %vm463_vm0, %v1202_v35 }
  0x2e   : > { %1141 = vmatmul.mubr.msk.bf16.vlgmr.msra.gmra.mrb[8].mxu1 %vm463_vm0, %v1202_v35  ;;  %803 = vmatprep.mubr.bf16.mxu0 %v1228_v0 }
  0x2f   : > { %856 = vmatprep.mubr.bf16.mxu1 %v1228_v0 }
  0x35   : > { %1140 = vmatmul.mubr.msk.bf16.gmra.mrb[12].mxu0 %vm463_vm0, %v1203_v36 }
  0x36   : > { %1142 = vmatmul.mubr.msk.bf16.gmra.mrb[12].mxu1 %vm463_vm0, %v1203_v36 }
  0x88   : > { %v451_v37 = vpop.permute.xlu0 %450  ;;  %v588_v38 = vpop.permute.xlu1 %587 }
  0x8c   : > { %v456_v40 = vpop.permute.xlu0 %455  ;;  %v593_v60 = vpop.permute.xlu1 %592 }
  0x90   : > { %v728_v17 = vpop.permute.xlu0 %727  ;;  %v733_v18 = vpop.permute.xlu1 %732 }
  0xf0   : > { %v501_v39 = vpop.f32.mrb[0].mxu0 }
  0xf1   : > { %v502_v41 = vadd.f32 %v501_v39, %v451_v37  ;;  %v544_v42 = vpop.f32.mrb[0].mxu1  ;;  %v503_v43 = vpop.f32.mrb[1].mxu0 }
  0xf2   : > { %v545_v44 = vadd.f32 %v544_v42, %v451_v37  ;;  %v504_v45 = vadd.f32 %v503_v43, %v451_v37  ;;  %v546_v46 = vpop.f32.mrb[1].mxu1  ;;  %v505_v47 = vpop.f32.mrb[2].mxu0 }
  0xf3   : > { %v547_v48 = vadd.f32 %v546_v46, %v451_v37  ;;  %v506_v49 = vadd.f32 %v505_v47, %v456_v40  ;;  %v548_v50 = vpop.f32.mrb[2].mxu1  ;;  %v507_v51 = vpop.f32.mrb[3].mxu0 }
  0xf4   : > { %v1157_v52 = vpack.c.bf16 %v504_v45, %v502_v41  ;;  %v549_v53 = vadd.f32 %v548_v50, %v456_v40  ;;  %v508_v54 = vadd.f32 %v507_v51, %v456_v40  ;;  %v550_v55 = vpop.f32.mrb[3].mxu1 }
  0xf5   : > { %v1158_v56 = vpack.c.bf16 %v547_v48, %v545_v44  ;;  %v551_v57 = vadd.f32 %v550_v55, %v456_v40  ;;  %v743_v40 = vpop.permute.xlu1 %742 }
  0xf6   : > { %577 = vst [vmem:[%s397_s27] sm:$0xff] %v1157_v52  ;;  %v1159_v58 = vpack.c.bf16 %v508_v54, %v506_v49 }
  0xf7   : > { %578 = vst [vmem:[%s397_s27 + $0x8] sm:$0xff] %v1158_v56  ;;  %v1160_v59 = vpack.c.bf16 %v551_v57, %v549_v53 }
  0xf8   : > { %579 = vst [vmem:[%s397_s27 + $0x10] sm:$0xff] %v1159_v58  ;;  %v637_v61 = vpop.f32.mrb[4].mxu0 }
  0xf9   : > { %580 = vst [vmem:[%s397_s27 + $0x18] sm:$0xff] %v1160_v59  ;;  %v638_v62 = vadd.f32 %v637_v61, %v588_v38  ;;  %v680_v63 = vpop.f32.mrb[4].mxu1  ;;  %v639_v0 = vpop.f32.mrb[5].mxu0 }
  0xfa   : > { %v681_v1 = vadd.f32 %v680_v63, %v588_v38  ;;  %v640_v2 = vadd.f32 %v639_v0, %v588_v38  ;;  %v682_v3 = vpop.f32.mrb[5].mxu1  ;;  %v641_v4 = vpop.f32.mrb[6].mxu0 }
  0xfb   : > { %v683_v5 = vadd.f32 %v682_v3, %v588_v38  ;;  %v642_v6 = vadd.f32 %v641_v4, %v593_v60  ;;  %v684_v7 = vpop.f32.mrb[6].mxu1  ;;  %v643_v8 = vpop.f32.mrb[7].mxu0 }
  0xfc   : > { %v1161_v9 = vpack.c.bf16 %v640_v2, %v638_v62  ;;  %v685_v10 = vadd.f32 %v684_v7, %v593_v60  ;;  %v644_v11 = vadd.f32 %v643_v8, %v593_v60  ;;  %v686_v12 = vpop.f32.mrb[7].mxu1  ;;  %v738_v38 = vpop.permute.xlu0 %737 }
  0xfd   : > { %v1162_v13 = vpack.c.bf16 %v683_v5, %v681_v1  ;;  %v687_v14 = vadd.f32 %v686_v12, %v593_v60 }
  0xfe   : > { %713 = vst [vmem:[%s407_s13] sm:$0xff] %v1161_v9  ;;  %v1163_v15 = vpack.c.bf16 %v644_v11, %v642_v6 }
  0xff   : > { %714 = vst [vmem:[%s407_s13 + $0x8] sm:$0xff] %v1162_v13  ;;  %v1164_v16 = vpack.c.bf16 %v687_v14, %v685_v10 }
 0x100   : > { %715 = vst [vmem:[%s407_s13 + $0x10] sm:$0xff] %v1163_v15  ;;  %v795_v19 = vpop.f32.mrb[8].mxu0 }
 0x101   : > { %716 = vst [vmem:[%s407_s13 + $0x18] sm:$0xff] %v1164_v16  ;;  %v796_v20 = vadd.f32 %v795_v19, %v728_v17  ;;  %v848_v21 = vpop.f32.mrb[8].mxu1  ;;  %v797_v22 = vpop.f32.mrb[9].mxu0 }
 0x102   : > { %v849_v23 = vadd.f32 %v848_v21, %v728_v17  ;;  %v798_v24 = vadd.f32 %v797_v22, %v728_v17  ;;  %v850_v25 = vpop.f32.mrb[9].mxu1  ;;  %v799_v26 = vpop.f32.mrb[10].mxu0 }
 0x103   : > { %v851_v27 = vadd.f32 %v850_v25, %v728_v17  ;;  %v800_v28 = vadd.f32 %v799_v26, %v733_v18  ;;  %v852_v29 = vpop.f32.mrb[10].mxu1  ;;  %v801_v30 = vpop.f32.mrb[11].mxu0 }
 0x104   : > { %v1165_v31 = vpack.c.bf16 %v798_v24, %v796_v20  ;;  %v853_v32 = vadd.f32 %v852_v29, %v733_v18  ;;  %v802_v33 = vadd.f32 %v801_v30, %v733_v18  ;;  %v854_v34 = vpop.f32.mrb[11].mxu1 }
 0x105   : > { %v1166_v35 = vpack.c.bf16 %v851_v27, %v849_v23  ;;  %v855_v36 = vadd.f32 %v854_v34, %v733_v18 }
 0x106   : > { %915 = vst [vmem:[%s1390_s17] sm:$0xff] %v1165_v31  ;;  %v1167_v37 = vpack.c.bf16 %v802_v33, %v800_v28 }
 0x107   : > { %916 = vst [vmem:[%s1390_s17 + $0x8] sm:$0xff] %v1166_v35  ;;  %v1168_v39 = vpack.c.bf16 %v855_v36, %v853_v32 }
 0x108   : > { %917 = vst [vmem:[%s1390_s17 + $0x10] sm:$0xff] %v1167_v37  ;;  %v805_v41 = vpop.f32.mrb[12].mxu0 }
 0x109   : > { %918 = vst [vmem:[%s1390_s17 + $0x18] sm:$0xff] %v1168_v39  ;;  %v806_v42 = vadd.f32 %v805_v41, %v738_v38  ;;  %v858_v43 = vpop.f32.mrb[12].mxu1  ;;  %v807_v44 = vpop.f32.mrb[13].mxu0 }
 0x10a   : > { %v859_v45 = vadd.f32 %v858_v43, %v738_v38  ;;  %v808_v46 = vadd.f32 %v807_v44, %v738_v38  ;;  %v860_v47 = vpop.f32.mrb[13].mxu1  ;;  %v809_v48 = vpop.f32.mrb[14].mxu0 }
 0x10b   : > { %v861_v49 = vadd.f32 %v860_v47, %v738_v38  ;;  %v810_v50 = vadd.f32 %v809_v48, %v743_v40  ;;  %v862_v51 = vpop.f32.mrb[14].mxu1  ;;  %v811_v52 = vpop.f32.mrb[15].mxu0 }
 0x10c   : > { %v1169_v53 = vpack.c.bf16 %v808_v46, %v806_v42  ;;  %v863_v54 = vadd.f32 %v862_v51, %v743_v40  ;;  %v812_v55 = vadd.f32 %v811_v52, %v743_v40  ;;  %v864_v56 = vpop.f32.mrb[15].mxu1 }
 0x10d   : > { %v1170_v57 = vpack.c.bf16 %v861_v49, %v859_v45  ;;  %v865_v58 = vadd.f32 %v864_v56, %v743_v40 }
 0x10e   : > { %919 = vst [vmem:[%s1390_s17 + $0x20] sm:$0xff] %v1169_v53  ;;  %v1171_v59 = vpack.c.bf16 %v812_v55, %v810_v50 }
 0x10f   : > { %920 = vst [vmem:[%s1390_s17 + $0x28] sm:$0xff] %v1170_v57  ;;  %v1172_v60 = vpack.c.bf16 %v865_v58, %v863_v54 }
 0x110   : > { %921 = vst [vmem:[%s1390_s17 + $0x30] sm:$0xff] %v1171_v59 }
 0x111   : > { %922 = vst [vmem:[%s1390_s17 + $0x38] sm:$0xff] %v1172_v60 }
 0x112 PF: > { %s20_s11 = sadd.s32 1, %s1226_s11   ;;  %s1419_s30 = smov %s1222_s10 }
 0x113   : > { %p17_p5 = scmp.ge.s32.totalorder %s20_s11, 4   ;;  %s1420_s10 = smov %s1422_s12 }
 0x115   :  { %19 = sbr.rel (!%p17_p5) target bundleno = 2 (0x2), region = 102 }

// kernel: self_attn_forward.3
= control target key start
LH: loop header
LB: loop body
LE: loop exit
PB: predicated region body
PF: predicated region fallthrough
CT: control target
= control target key end

     0   :  { %s2863_s0 = inlined_call_operand.vmem [shape: bf16[2,16,512], index: 0, kind: input, shape index: {}]   ;;  %s2864_s1 = inlined_call_operand.vmem [shape: bf16[2,16,512], index: 1, kind: input, shape index: {}]   ;;  %s2865_s2 = inlined_call_operand.vmem [shape: bf16[2,32,512], index: 2, kind: input, shape index: {}]   ;;  %s2866_s3 = inlined_call_operand.vmem [shape: f32[2,32,512], index: 3, kind: input, shape index: {}]   ;;  %s2867_s4 = inlined_call_operand.<no memory space> [shape: f32[1,1], index: 4, kind: input, shape index: {}]   ;;  %s2868_s5 = inlined_call_operand.vmem [shape: f32[2,32,512], index: 5, kind: output, shape index: {}]  }
   0x1   :  { %v10_v0 = vstv %s2867_s4 }
   0x2   :  { %11 = vst [vmem:[#allocation5] sm:$0x1] %v10_v0 }
   0x3   :  { %s2027_s20 = smov 0   ;;  %s2029_s21 = smov 0  }
   0x4   :  { %s2031_s22 = smov 0   ;;  %s2033_s23 = smov 0  }
   0x5   :  { %s2035_s24 = smov 0   ;;  %s2037_s25 = smov 0  }
   0x6   :  { %s2039_s26 = smov 0   ;;  %s2041_s27 = smov 0  }
   0x7   :  { %s2043_s28 = smov 0   ;;  %s2045_s4 = smov 0  }
   0x8   :  { %s2047_s29 = smov 0  }
   0x9 LB: > { %s29_s30 = sadd.s32 1, %s1976_s27  ;;  %s32_s6 = sadd.s32 1, %s1980_s28  ;;  %s1988_s29 = sphi %s2047_s29, %s17_s29   ;;  %s1984_s4 = sphi %s2045_s4, %s3076_s4   ;;  %s1980_s28 = sphi %s2043_s28, %s3075_s28   ;;  %s1976_s27 = sphi %s2041_s27, %s3074_s27   ;;  %s1972_s26 = sphi %s2039_s26, %s3073_s26   ;;  %s1968_s25 = sphi %s2037_s25, %s3072_s25   ;;  %s1964_s24 = sphi %s2035_s24, %s3071_s24   ;;  %s1960_s23 = sphi %s2033_s23, %s3070_s23   ;;  %s1956_s22 = sphi %s2031_s22, %s3069_s22   ;;  %s1952_s21 = sphi %s2029_s21, %s3068_s21   ;;  %s1948_s20 = sphi %s2027_s20, %s3067_s20  }
   0xa   : > { %p30_p0 = scmp.ge.s32.totalorder %s29_s30, 2  ;;  %p52_p1 = scmp.ne.s32.totalorder %s1960_s23, %s1956_s22 }
   0xb   : > { %p53_p2 = scmp.eq.s32.totalorder %s1988_s29, 0  ;;  %s36_s7 = sadd.s32 1, %s1984_s4 }
   0xc   : > { %s3078_s30 = smov (%p30_p0, %s29_s30), 0  ;;  %s3080_s6 = smov (!%p30_p0, %s32_s6), %s1980_s28 }
   0xd   : > { %2922 = sst [smem:[#allocation11_spill]] %s3078_s30  ;;  %p34_p3 = scmp.ge.s32.totalorder %s3080_s6, 2 }
   0xe   : > { %s1606_s8 = sadd.s32 4294967295, %s1988_s29   ;;  %p2095_p4 = por %p53_p2, %p52_p1 }
   0xf   : > { %s3082_s6 = smov (%p34_p3, %s3080_s6), 0  ;;  %s3084_s7 = smov (!%p34_p3, %s36_s7), %s1984_s4 }
  0x10   : > { %2924 = sst [smem:[#allocation12_spill]] %s3082_s6  ;;  %s69_s10 = ssub.s32 %s1976_s27, %s3078_s30 }
  0x11   : > { %p80_p5 = scmp.ne.s32.totalorder %s1952_s21, %s1948_s20  ;;  %p38_p6 = scmp.ge.s32.totalorder %s3084_s7, 2 }
  0x12   : > { %p189_p7 = scmp.eq.s32.totalorder %s1606_s8, 7  ;;  %s41_s11 = ssub.s32 %s1980_s28, %s3082_s6 }
  0x13   : > { %p2108_p8 = por %p80_p5, %p53_p2  ;;  %s3086_s7 = smov (%p38_p6, %s3084_s7), 0 }
  0x14   : > { %2926 = sst [smem:[#allocation13_spill]] %s3086_s7  ;;  %s45_s13 = sadd.s32 1, %s1960_s23 }
  0x15   : > { %p2118_p9 = por %p189_p7, %p52_p1  ;;  %s40_s15 = ssub.s32 %s1984_s4, %s3086_s7 }
  0x16   : > { %s73_s16 = sadd.s32 1, %s1952_s21  ;;  %s42_s17 = sor.u32 %s41_s11, %s40_s15 }
  0x17   : > { %s70_s18 = sor.u32 %s69_s10, %s40_s15  ;;  %p43_p10 = scmp.eq.s32.totalorder %s42_s17, 0 }
  0x18   : > { %p71_p11 = scmp.eq.s32.totalorder %s70_s18, 0  ;;  %p1609_p12 = scmp.ge.s32.totalorder %s1988_s29, 8 }
  0x19   : > { %s2126_s19 = scalar_select %p43_p10, %s1960_s23, %s45_s13  }
  0x1a   : > { %s2129_s8 = scalar_select %p71_p11, %s1952_s21, %s73_s16  }
  0x1b   : > { %2928 = sst [smem:[#allocation14_spill]] %s2126_s19  ;;  %214 = sbr.rel (%p1609_p12) target bundleno = 70 (0x46), region = 20 }
  0x1c   : > { %2929 = sst [smem:[#allocation15_spill]] %s2129_s8 }
  0x22   : > { %217 = sbr.rel (!%p2095_p4) target bundleno = 42 (0x2a), region = 24  ;;  %s219_s6 = sand.u32 (%p2095_p4), 1, %s1960_s23  }
  0x23   : > { %s1611_s7 = sshll.u32 (%p2095_p4), %s1980_s28, 1  ;;  %s1610_s30 = sshll.u32 (%p2095_p4), %s219_s6, 4 }
  0x24   : > { %s1612_s11 = sshll.u32 (%p2095_p4), %s1984_s4, 3  ;;  %s221_s18 = scalar_lea.vmem (%p2095_p4), [#allocation6], %s1610_s30 }
  0x25   : > { %s224_s10 = sadd.s32 (%p2095_p4), %s1612_s11, %s1611_s7 }
  0x26   : > { %s1613_s15 = sshll.u32 (%p2095_p4), %s224_s10, 2 }
  0x27   : > { %s226_s16 = scalar_lea.vmem (%p2095_p4), %s2863_s0, %s1613_s15 }
  0x28   : > { %v256_v1 = vld [vmem:[%s226_s16] sm:$0xff] (%p2095_p4)  ;;  %v258_v2 = vld [vmem:[%s226_s16 + $0x10] sm:$0xff] (%p2095_p4) }
  0x29   : > { %257 = vst [vmem:[%s221_s18] sm:$0xff] %v256_v1  ;;  %259 = vst [vmem:[%s221_s18 + $0x8] sm:$0xff] %v258_v2 }
  0x2a PF: > { %265 = sbr.rel (!%p2108_p8) target bundleno = 50 (0x32), region = 62  ;;  %s267_s6 = sand.u32 (%p2108_p8), 1, %s1952_s21  }
  0x2b   : > { %s1615_s19 = sshll.u32 (%p2108_p8), %s1976_s27, 1  ;;  %s1614_s7 = sshll.u32 (%p2108_p8), %s267_s6, 4 }
  0x2c   : > { %s1616_s11 = sshll.u32 (%p2108_p8), %s1984_s4, 3  ;;  %s269_s30 = scalar_lea.vmem (%p2108_p8), [#allocation7], %s1614_s7 }
  0x2d   : > { %s272_s10 = sadd.s32 (%p2108_p8), %s1616_s11, %s1615_s19 }
  0x2e   : > { %s1617_s8 = sshll.u32 (%p2108_p8), %s272_s10, 2 }
  0x2f   : > { %s274_s13 = scalar_lea.vmem (%p2108_p8), %s2864_s1, %s1617_s8 }
  0x30   : > { %v304_v3 = vld [vmem:[%s274_s13] sm:$0xff] (%p2108_p8)  ;;  %v306_v4 = vld [vmem:[%s274_s13 + $0x10] sm:$0xff] (%p2108_p8) }
  0x31   : > { %305 = vst [vmem:[%s269_s30] sm:$0xff] %v304_v3  ;;  %307 = vst [vmem:[%s269_s30 + $0x8] sm:$0xff] %v306_v4 }
  0x32 PF: > { %313 = sbr.rel (!%p2108_p8) target bundleno = 59 (0x3b), region = 100  ;;  %s315_s16 = sand.u32 (%p2108_p8), 1, %s1952_s21  }
  0x33   : > { %s1619_s18 = sshll.u32 (%p2108_p8), %s1976_s27, 1  ;;  %s1618_s19 = sshll.u32 (%p2108_p8), %s315_s16, 5 }
  0x34   : > { %s1620_s6 = sshll.u32 (%p2108_p8), %s1984_s4, 4  ;;  %s317_s7 = scalar_lea.vmem (%p2108_p8), [#allocation8], %s1618_s19 }
  0x35   : > { %s320_s11 = sadd.s32 (%p2108_p8), %s1620_s6, %s1619_s18 }
  0x36   : > { %s1621_s10 = sshll.u32 (%p2108_p8), %s320_s11, 2 }
  0x37   : > { %s322_s15 = scalar_lea.vmem (%p2108_p8), %s2865_s2, %s1621_s10 }
  0x38   : > { %v356_v5 = vld [vmem:[%s322_s15] sm:$0xff] (%p2108_p8)  ;;  %v358_v6 = vld [vmem:[%s322_s15 + $0x10] sm:$0xff] (%p2108_p8) }
  0x39   : > { %v360_v7 = vld [vmem:[%s322_s15 + $0x20] sm:$0xff]  ;;  %357 = vst [vmem:[%s317_s7] sm:$0xff] %v356_v5  ;;  %359 = vst [vmem:[%s317_s7 + $0x8] sm:$0xff] %v358_v6  ;;  %v362_v8 = vld [vmem:[%s322_s15 + $0x30] sm:$0xff] }
  0x3a   : > { %361 = vst [vmem:[%s317_s7 + $0x10] sm:$0xff] %v360_v7  ;;  %363 = vst [vmem:[%s317_s7 + $0x18] sm:$0xff] %v362_v8 }
  0x3b PF: > { %369 = sbr.rel (!%p2095_p4) target bundleno = 70 (0x46), region = 138  ;;  %s371_s12 = sand.u32 (%p2095_p4), 1, %s1960_s23  }
  0x3c   : > { %s1623_s13 = sshll.u32 (%p2095_p4), %s1980_s28, 1  ;;  %s1622_s30 = sshll.u32 (%p2095_p4), %s371_s12, 6 }
  0x3d   : > { %s1624_s16 = sshll.u32 (%p2095_p4), %s1984_s4, 4  ;;  %s373_s17 = scalar_lea.vmem (%p2095_p4), [#allocation9], %s1622_s30 }
  0x3e   : > { %s376_s18 = sadd.s32 (%p2095_p4), %s1624_s16, %s1623_s13 }
  0x3f   : > { %s1625_s6 = sshll.u32 (%p2095_p4), %s376_s18, 3 }
  0x40   : > { %s378_s10 = scalar_lea.vmem (%p2095_p4), %s2866_s3, %s1625_s6 }
  0x41   : > { %v391_v9 = vld [vmem:[%s378_s10] sm:$0xff] (%p2095_p4)  ;;  %v393_v10 = vld [vmem:[%s378_s10 + $0x8] sm:$0xff] (%p2095_p4) }
  0x42   : > { %v395_v11 = vld [vmem:[%s378_s10 + $0x20] sm:$0xff]  ;;  %392 = vst [vmem:[%s373_s17] sm:$0xff] %v391_v9  ;;  %394 = vst [vmem:[%s373_s17 + $0x8] sm:$0xff] %v393_v10  ;;  %v397_v12 = vld [vmem:[%s378_s10 + $0x28] sm:$0xff] }
  0x43   : > { %396 = vst [vmem:[%s373_s17 + $0x10] sm:$0xff] %v395_v11  ;;  %v399_v13 = vld [vmem:[%s378_s10 + $0x40] sm:$0xff]  ;;  %v401_v14 = vld [vmem:[%s378_s10 + $0x48] sm:$0xff]  ;;  %398 = vst [vmem:[%s373_s17 + $0x18] sm:$0xff] %v397_v12 }
  0x44   : > { %400 = vst [vmem:[%s373_s17 + $0x20] sm:$0xff] %v399_v13  ;;  %402 = vst [vmem:[%s373_s17 + $0x28] sm:$0xff] %v401_v14  ;;  %v403_v15 = vld [vmem:[%s378_s10 + $0x60] sm:$0xff]  ;;  %v405_v16 = vld [vmem:[%s378_s10 + $0x68] sm:$0xff] }
  0x45   : > { %404 = vst [vmem:[%s373_s17 + $0x30] sm:$0xff] %v403_v15  ;;  %406 = vst [vmem:[%s373_s17 + $0x38] sm:$0xff] %v405_v16 }
  0x46 PF: > { %p1626_p13 = scmp.ge.s32.totalorder %s1988_s29, 1  ;;  %p411_p0 = scmp.lt.s32.totalorder %s1988_s29, 9 }
  0x48   : > { %p412_p1 = pnand %p1626_p13, %p411_p0 }
  0x4a   : > { %415 = sbr.rel (%p412_p1) target bundleno = 895 (0x37f), region = 161 }
  0x51   : > { %s418_s9 = sand.u32 1, %s1956_s22   ;;  %s425_s8 = sand.u32 1, %s1948_s20  }
  0x52   : > { %s2168_s15 = sshll.u32 %s418_s9, 4  ;;  %s2170_s7 = sshll.u32 %s425_s8, 4 }
  0x53   : > { %s1629_s12 = sshll.u32 %s425_s8, 5  ;;  %s1630_s13 = sshll.u32 %s418_s9, 6 }
  0x54   : > { %s420_s30 = scalar_lea.vmem [#allocation6], %s2168_s15  ;;  %s427_s16 = scalar_lea.vmem [#allocation7], %s2170_s7 }
  0x55   : > { %s2174_s18 = scalar_lea.vmem [#allocation8], %s1629_s12  ;;  %s2176_s6 = scalar_lea.vmem [#allocation9], %s1630_s13 }
  0x56   : > { %s2178_s11 = scalar_lea.vmem [#allocation10], %s1630_s13  ;;  %p1632_p2 = scmp.ne.s32.totalorder %s1964_s24, 0 }
  0x57   : > { %v487_v17 = vlaneseq (!%p1632_p2)  ;;  %v1990_v18 = vmov (!%p1632_p2), 0.0   ;;  %v1991_v19 = vmov (!%p1632_p2), -inf  }
  0x58   : > { %486 = sbr.rel (%p1632_p2) target bundleno = 95 (0x5f), region = 181  ;;  %493 = vst [vmem:[#allocation4] sm:$0xff] (!%p1632_p2), %v1990_v18  ;;  %494 = vst [vmem:[#allocation4 + $0x8] sm:$0xff] (!%p1632_p2), %v1990_v18 }
  0x59   : > { %495 = vst [vmem:[#allocation4 + $0x10] sm:$0xff] (!%p1632_p2), %v1990_v18  ;;  %496 = vst [vmem:[#allocation4 + $0x18] sm:$0xff] (!%p1632_p2), %v1990_v18  ;;  %vm489_vm0 = vcmp.lt.s32.totalorder (!%p1632_p2), %v487_v17, 256 }
  0x5a   : > { %497 = vst [vmem:[#allocation4 + $0x20] sm:$0xff] (!%p1632_p2), %v1990_v18  ;;  %498 = vst [vmem:[#allocation4 + $0x28] sm:$0xff] (!%p1632_p2), %v1990_v18 }
  0x5b   : > { %499 = vst [vmem:[#allocation4 + $0x30] sm:$0xff] (!%p1632_p2), %v1990_v18  ;;  %500 = vst [vmem:[#allocation4 + $0x38] sm:$0xff] (!%p1632_p2), %v1990_v18 }
  0x5c   : > { %491 = vst.msk [vmem:[#allocation2] sm:$0x3] (!%p1632_p2), %vm489_vm0, %v1991_v19  ;;  %492 = vst.msk [vmem:[#allocation3] sm:$0x3] (!%p1632_p2), %vm489_vm0, %v1990_v18 }
  0x5f PF: > { %v1758_v20 = vld [vmem:[%s427_s16] ss:$8 sps:$4 sm:$0xff]   ;;  %v1992_v21 = vmov 0   ;;  %v1761_v22 = vld [vmem:[%s420_s30 + $0x4] ss:$8 sps:$4 sm:$0xff]   ;;  %vm561_vm1 = vcmask 130048  }
  0x60   : > { %642 = vmatprep.mubr.bf16.mxu0 %v1992_v21  ;;  %519 = vxpose.xlu0.c.b16.start.end [1/1] (short) %v1758_v20, 128  ;;  %v1763_v23 = vld [vmem:[%s420_s30] ss:$8 sps:$4 sm:$0xff]   ;;  %v1760_v24 = vld [vmem:[%s427_s16 + $0x4] ss:$8 sps:$4 sm:$0xff]   ;;  %p1657_p3 = scmp.ne.s32.totalorder %s1964_s24, 1 }
  0x61   : > { %610 = vmatprep.subr.bf16.mxu0 %v1761_v22 }
  0x62   : > { %611 = vmatpush1.bf16.msra.mxu0 %v1763_v23 }
  0x7d   : > { %535 = vxpose.xlu0.c.b16.start.end [1/1] (short) %v1760_v24, 128 }
  0xc6   : > { %v527_v25 = vpop.trf.xlu0 }
  0xc7   : > { %1637 = vmatmul.mubr.msk.bf16.vlgmr.msra.gmra.mrb[0].mxu0 %vm561_vm1, %v527_v25 }
  0xc8   : > { %652 = vmatprep.mubr.bf16.mxu0 %v1992_v21 }
  0xca   : > { %v528_v26 = vpop.trf.xlu0 }
  0xce   : > { %v529_v27 = vpop.trf.xlu0 }
  0xcf   : > { %1638 = vmatmul.mubr.msk.bf16.gmra.mrb[4].mxu0 %vm561_vm1, %v528_v26 }
  0xd0   : > { %662 = vmatprep.mubr.bf16.mxu0 %v1992_v21 }
  0xd2   : > { %v530_v28 = vpop.trf.xlu0 }
  0xd6   : > { %v531_v29 = vpop.trf.xlu0 }
  0xd7   : > { %1639 = vmatmul.mubr.msk.bf16.gmra.mrb[8].mxu0 %vm561_vm1, %v529_v27 }
  0xd8   : > { %672 = vmatprep.mubr.bf16.mxu0 %v1992_v21 }
  0xda   : > { %v532_v30 = vpop.trf.xlu0 }
  0xde   : > { %v533_v31 = vpop.trf.xlu0 }
  0xdf   : > { %1640 = vmatmul.mubr.msk.bf16.gmra.mrb[12].mxu0 %vm561_vm1, %v530_v28 }
  0xe0   : > { %682 = vmatprep.mubr.bf16.mxu0 %v1992_v21 }
  0xe2   : > { %v534_v32 = vpop.trf.xlu0 }
  0xe6   : > { %v543_v33 = vpop.trf.xlu0 }
  0xe7   : > { %1641 = vmatmul.mubr.msk.bf16.gmra.mrb[16].mxu0 %vm561_vm1, %v531_v29 }
  0xe8   : > { %692 = vmatprep.mubr.bf16.mxu0 %v1992_v21 }
  0xea   : > { %v544_v34 = vpop.trf.xlu0 }
  0xee   : > { %v545_v35 = vpop.trf.xlu0 }
  0xef   : > { %1642 = vmatmul.mubr.msk.bf16.gmra.mrb[20].mxu0 %vm561_vm1, %v532_v30 }
  0xf0   : > { %702 = vmatprep.mubr.bf16.mxu0 %v1992_v21 }
  0xf2   : > { %v546_v36 = vpop.trf.xlu0 }
  0xf6   : > { %v547_v37 = vpop.trf.xlu0 }
  0xf7   : > { %1643 = vmatmul.mubr.msk.bf16.gmra.mrb[24].mxu0 %vm561_vm1, %v533_v31 }
  0xf8   : > { %712 = vmatprep.mubr.bf16.mxu0 %v1992_v21 }
  0xfa   : > { %v548_v38 = vpop.trf.xlu0 }
  0xfe   : > { %v549_v39 = vpop.trf.xlu0 }
  0xff   : > { %1644 = vmatmul.mubr.msk.bf16.gmra.mrb[28].mxu0 %vm561_vm1, %v534_v32 }
 0x100   : > { %722 = vmatprep.mubr.bf16.mxu0 %v1992_v21 }
 0x102   : > { %v550_v40 = vpop.trf.xlu0 }
 0x107   : > { %1645 = vmatmul.mubr.msk.bf16.gmra.mrb[32].mxu0 %vm561_vm1, %v543_v33 }
 0x108   : > { %732 = vmatprep.mubr.bf16.mxu0 %v1992_v21 }
 0x10f   : > { %1646 = vmatmul.mubr.msk.bf16.gmra.mrb[36].mxu0 %vm561_vm1, %v544_v34 }
 0x110   : > { %742 = vmatprep.mubr.bf16.mxu0 %v1992_v21 }
 0x117   : > { %1647 = vmatmul.mubr.msk.bf16.gmra.mrb[40].mxu0 %vm561_vm1, %v545_v35 }
 0x118   : > { %752 = vmatprep.mubr.bf16.mxu0 %v1992_v21 }
 0x11f   : > { %1648 = vmatmul.mubr.msk.bf16.gmra.mrb[44].mxu0 %vm561_vm1, %v546_v36 }
 0x120   : > { %762 = vmatprep.mubr.bf16.mxu0 %v1992_v21 }
 0x127   : > { %1649 = vmatmul.mubr.msk.bf16.gmra.mrb[48].mxu0 %vm561_vm1, %v547_v37 }
 0x128   : > { %772 = vmatprep.mubr.bf16.mxu0 %v1992_v21 }
 0x12f   : > { %1650 = vmatmul.mubr.msk.bf16.gmra.mrb[52].mxu0 %vm561_vm1, %v548_v38 }
 0x130   : > { %782 = vmatprep.mubr.bf16.mxu0 %v1992_v21 }
 0x137   : > { %1651 = vmatmul.mubr.msk.bf16.gmra.mrb[56].mxu0 %vm561_vm1, %v549_v39 }
 0x138   : > { %792 = vmatprep.mubr.bf16.mxu0 %v1992_v21 }
 0x13f   : > { %1652 = vmatmul.mubr.msk.bf16.gmra.mrb[60].mxu0 %vm561_vm1, %v550_v40 }
 0x19a   : > { %v2197_v41 = vpop.f32.mrb[0].mxu0 }
 0x19b   : > { %v2199_v42 = vpop.f32.mrb[1].mxu0 }
 0x19c   : > { %v2201_v43 = vpop.f32.mrb[2].mxu0 }
 0x19d   : > { %v2203_v44 = vpop.f32.mrb[3].mxu0 }
 0x1a2   : > { %v2205_v45 = vpop.f32.mrb[4].mxu0 }
 0x1a3   : > { %v804_v46 = vmax.f32 %v2197_v41, %v2205_v45  ;;  %v2209_v47 = vpop.f32.mrb[5].mxu0 }
 0x1a4   : > { %v841_v48 = vmax.f32 %v2199_v42, %v2209_v47  ;;  %v2213_v49 = vpop.f32.mrb[6].mxu0 }
 0x1a5   : > { %v805_v50 = vmax.f32 %v2201_v43, %v2213_v49  ;;  %v2217_v51 = vpop.f32.mrb[7].mxu0 }
 0x1a6   : > { %v842_v52 = vmax.f32 %v2203_v44, %v2217_v51 }
 0x1aa   : > { %v2221_v53 = vpop.f32.mrb[8].mxu0 }
 0x1ab   : > { %v806_v54 = vmax.f32 %v804_v46, %v2221_v53  ;;  %v2224_v55 = vpop.f32.mrb[9].mxu0 }
 0x1ac   : > { %v843_v56 = vmax.f32 %v841_v48, %v2224_v55  ;;  %v2227_v57 = vpop.f32.mrb[10].mxu0 }
 0x1ad   : > { %v807_v58 = vmax.f32 %v805_v50, %v2227_v57  ;;  %v2230_v59 = vpop.f32.mrb[11].mxu0 }
 0x1ae   : > { %v844_v60 = vmax.f32 %v842_v52, %v2230_v59 }
 0x1b2   : > { %v2233_v61 = vpop.f32.mrb[12].mxu0 }
 0x1b3   : > { %v808_v62 = vmax.f32 %v806_v54, %v2233_v61  ;;  %v2236_v63 = vpop.f32.mrb[13].mxu0 }
 0x1b4   : > { %v845_v0 = vmax.f32 %v843_v56, %v2236_v63  ;;  %v2239_v1 = vpop.f32.mrb[14].mxu0 }
 0x1b5   : > { %v809_v2 = vmax.f32 %v807_v58, %v2239_v1  ;;  %v2242_v3 = vpop.f32.mrb[15].mxu0 }
 0x1b6   : > { %v846_v4 = vmax.f32 %v844_v60, %v2242_v3 }
 0x1ba   : > { %v2245_v5 = vpop.f32.mrb[16].mxu0 }
 0x1bb   : > { %v810_v6 = vmax.f32 %v808_v62, %v2245_v5  ;;  %v2248_v7 = vpop.f32.mrb[17].mxu0 }
 0x1bc   : > { %v847_v8 = vmax.f32 %v845_v0, %v2248_v7  ;;  %v2251_v9 = vpop.f32.mrb[18].mxu0 }
 0x1bd   : > { %v811_v10 = vmax.f32 %v809_v2, %v2251_v9  ;;  %v2254_v11 = vpop.f32.mrb[19].mxu0 }
 0x1be   : > { %v848_v12 = vmax.f32 %v846_v4, %v2254_v11 }
 0x1c2   : > { %v2257_v13 = vpop.f32.mrb[20].mxu0 }
 0x1c3   : > { %v812_v14 = vmax.f32 %v810_v6, %v2257_v13  ;;  %v2260_v15 = vpop.f32.mrb[21].mxu0 }
 0x1c4   : > { %v849_v16 = vmax.f32 %v847_v8, %v2260_v15  ;;  %v2263_v17 = vpop.f32.mrb[22].mxu0 }
 0x1c5   : > { %v813_v18 = vmax.f32 %v811_v10, %v2263_v17  ;;  %v2266_v19 = vpop.f32.mrb[23].mxu0 }
 0x1c6   : > { %v850_v20 = vmax.f32 %v848_v12, %v2266_v19 }
 0x1ca   : > { %v2269_v21 = vpop.f32.mrb[24].mxu0 }
 0x1cb   : > { %v814_v22 = vmax.f32 %v812_v14, %v2269_v21  ;;  %v2272_v23 = vpop.f32.mrb[25].mxu0 }
 0x1cc   : > { %v851_v24 = vmax.f32 %v849_v16, %v2272_v23  ;;  %v2275_v25 = vpop.f32.mrb[26].mxu0 }
 0x1cd   : > { %v815_v26 = vmax.f32 %v813_v18, %v2275_v25  ;;  %v2278_v27 = vpop.f32.mrb[27].mxu0 }
 0x1ce   : > { %v852_v28 = vmax.f32 %v850_v20, %v2278_v27 }
 0x1d2   : > { %v2281_v29 = vpop.f32.mrb[28].mxu0 }
 0x1d3   : > { %v816_v30 = vmax.f32 %v814_v22, %v2281_v29  ;;  %v2284_v31 = vpop.f32.mrb[29].mxu0 }
 0x1d4   : > { %v853_v32 = vmax.f32 %v851_v24, %v2284_v31  ;;  %v2287_v33 = vpop.f32.mrb[30].mxu0 }
 0x1d5   : > { %v817_v34 = vmax.f32 %v815_v26, %v2287_v33  ;;  %v2290_v35 = vpop.f32.mrb[31].mxu0 }
 0x1d6   : > { %v854_v36 = vmax.f32 %v852_v28, %v2290_v35 }
 0x1da   : > { %v2293_v37 = vpop.f32.mrb[32].mxu0 }
 0x1db   : > { %v818_v38 = vmax.f32 %v816_v30, %v2293_v37  ;;  %v2296_v39 = vpop.f32.mrb[33].mxu0 }
 0x1dc   : > { %v855_v40 = vmax.f32 %v853_v32, %v2296_v39  ;;  %v2299_v46 = vpop.f32.mrb[34].mxu0 }
 0x1dd   : > { %v819_v48 = vmax.f32 %v817_v34, %v2299_v46  ;;  %v2302_v50 = vpop.f32.mrb[35].mxu0 }
 0x1de   : > { %v856_v52 = vmax.f32 %v854_v36, %v2302_v50 }
 0x1e2   : > { %v2305_v54 = vpop.f32.mrb[36].mxu0 }
 0x1e3   : > { %v820_v56 = vmax.f32 %v818_v38, %v2305_v54  ;;  %v2308_v58 = vpop.f32.mrb[37].mxu0 }
 0x1e4   : > { %v857_v60 = vmax.f32 %v855_v40, %v2308_v58  ;;  %v2311_v62 = vpop.f32.mrb[38].mxu0 }
 0x1e5   : > { %v821_v0 = vmax.f32 %v819_v48, %v2311_v62  ;;  %v2314_v2 = vpop.f32.mrb[39].mxu0 }
 0x1e6   : > { %v858_v4 = vmax.f32 %v856_v52, %v2314_v2 }
 0x1ea   : > { %v2317_v6 = vpop.f32.mrb[40].mxu0 }
 0x1eb   : > { %2930 = vst [vmem:[#allocation16_spill] sm:$0xff] %v2317_v6  ;;  %v822_v8 = vmax.f32 %v820_v56, %v2317_v6  ;;  %v2320_v10 = vpop.f32.mrb[41].mxu0 }
 0x1ec   : > { %2931 = vst [vmem:[#allocation17_spill] sm:$0xff] %v2320_v10  ;;  %v859_v12 = vmax.f32 %v857_v60, %v2320_v10  ;;  %v2323_v14 = vpop.f32.mrb[42].mxu0 }
 0x1ed   : > { %2932 = vst [vmem:[#allocation18_spill] sm:$0xff] %v2323_v14  ;;  %v823_v16 = vmax.f32 %v821_v0, %v2323_v14  ;;  %v2326_v18 = vpop.f32.mrb[43].mxu0 }
 0x1ee   : > { %2933 = vst [vmem:[#allocation19_spill] sm:$0xff] %v2326_v18  ;;  %v860_v20 = vmax.f32 %v858_v4, %v2326_v18 }
 0x1f2   : > { %v2329_v22 = vpop.f32.mrb[44].mxu0 }
 0x1f3   : > { %2934 = vst [vmem:[#allocation20_spill] sm:$0xff] %v2329_v22  ;;  %v824_v24 = vmax.f32 %v822_v8, %v2329_v22  ;;  %v2332_v26 = vpop.f32.mrb[45].mxu0 }
 0x1f4   : > { %2935 = vst [vmem:[#allocation21_spill] sm:$0xff] %v2332_v26  ;;  %v861_v28 = vmax.f32 %v859_v12, %v2332_v26  ;;  %v2335_v30 = vpop.f32.mrb[46].mxu0  ;;  %v1993_v26 = vmov 1966171168  }
 0x1f5   : > { %2936 = vst [vmem:[#allocation22_spill] sm:$0xff] %v2335_v30  ;;  %v825_v32 = vmax.f32 %v823_v16, %v2335_v30  ;;  %v2338_v34 = vpop.f32.mrb[47].mxu0 }
 0x1f6   : > { %2937 = vst [vmem:[#allocation23_spill] sm:$0xff] %v2338_v34  ;;  %v862_v36 = vmax.f32 %v860_v20, %v2338_v34 }
 0x1fa   : > { %v2341_v38 = vpop.f32.mrb[48].mxu0 }
 0x1fb   : > { %2938 = vst [vmem:[#allocation24_spill] sm:$0xff] %v2341_v38  ;;  %v826_v40 = vmax.f32 %v824_v24, %v2341_v38  ;;  %v2344_v48 = vpop.f32.mrb[49].mxu0 }
 0x1fc   : > { %2939 = vst [vmem:[#allocation25_spill] sm:$0xff] %v2344_v48  ;;  %v863_v52 = vmax.f32 %v861_v28, %v2344_v48  ;;  %v2347_v56 = vpop.f32.mrb[50].mxu0 }
 0x1fd   : > { %2940 = vst [vmem:[#allocation26_spill] sm:$0xff] %v2347_v56  ;;  %v827_v60 = vmax.f32 %v825_v32, %v2347_v56  ;;  %v2350_v0 = vpop.f32.mrb[51].mxu0 }
 0x1fe   : > { %2941 = vst [vmem:[#allocation27_spill] sm:$0xff] %v2350_v0  ;;  %v864_v4 = vmax.f32 %v862_v36, %v2350_v0 }
 0x202   : > { %v2353_v8 = vpop.f32.mrb[52].mxu0 }
 0x203   : > { %2942 = vst [vmem:[#allocation28_spill] sm:$0xff] %v2353_v8  ;;  %v828_v12 = vmax.f32 %v826_v40, %v2353_v8  ;;  %v2356_v16 = vpop.f32.mrb[53].mxu0 }
 0x204   : > { %2943 = vst [vmem:[#allocation29_spill] sm:$0xff] %v2356_v16  ;;  %v865_v20 = vmax.f32 %v863_v52, %v2356_v16  ;;  %v2359_v24 = vpop.f32.mrb[54].mxu0 }
 0x205   : > { %2944 = vst [vmem:[#allocation30_spill] sm:$0xff] %v2359_v24  ;;  %v829_v28 = vmax.f32 %v827_v60, %v2359_v24  ;;  %v2362_v48 = vpop.f32.mrb[55].mxu0 }
 0x206   : > { %2945 = vst [vmem:[#allocation31_spill] sm:$0xff] %v2362_v48  ;;  %v866_v32 = vmax.f32 %v864_v4, %v2362_v48 }
 0x20a   : > { %v2365_v56 = vpop.f32.mrb[56].mxu0 }
 0x20b   : > { %2946 = vst [vmem:[#allocation32_spill] sm:$0xff] %v2365_v56  ;;  %v830_v36 = vmax.f32 %v828_v12, %v2365_v56  ;;  %v2368_v0 = vpop.f32.mrb[57].mxu0 }
 0x20c   : > { %2947 = vst [vmem:[#allocation33_spill] sm:$0xff] %v2368_v0  ;;  %v867_v40 = vmax.f32 %v865_v20, %v2368_v0  ;;  %v2371_v8 = vpop.f32.mrb[58].mxu0 }
 0x20d   : > { %2948 = vst [vmem:[#allocation34_spill] sm:$0xff] %v2371_v8  ;;  %v831_v52 = vmax.f32 %v829_v28, %v2371_v8  ;;  %v2374_v16 = vpop.f32.mrb[59].mxu0 }
 0x20e   : > { %2949 = vst [vmem:[#allocation35_spill] sm:$0xff] %v2374_v16  ;;  %v868_v60 = vmax.f32 %v866_v32, %v2374_v16 }
 0x212   : > { %v2377_v24 = vpop.f32.mrb[60].mxu0 }
 0x213   : > { %2950 = vst [vmem:[#allocation36_spill] sm:$0xff] %v2377_v24  ;;  %v832_v4 = vmax.f32 %v830_v36, %v2377_v24  ;;  %v2380_v48 = vpop.f32.mrb[61].mxu0  ;;  %v882_v36 = vunpack.c.l.s4 %v1993_v26  ;;  %v884_v24 = vlaneseq }
 0x214   : > { %2951 = vst [vmem:[#allocation37_spill] sm:$0xff] %v2380_v48  ;;  %v869_v12 = vmax.f32 %v867_v40, %v2380_v48  ;;  %v2383_v56 = vpop.f32.mrb[62].mxu0 }
 0x215   : > { %2952 = vst [vmem:[#allocation38_spill] sm:$0xff] %v2383_v56  ;;  %v833_v20 = vmax.f32 %v831_v52, %v2383_v56  ;;  %v2386_v0 = vpop.f32.mrb[63].mxu0  ;;  %v883_v14 = vunpack.c.0.s8 %v882_v36  ;;  %v885_v52 = vshrl.u32 %v884_v24, 7  ;;  %vm2398_vm2 = vcmp.lt.s32.totalorder %v884_v24, 256 }
 0x216   : > { %2953 = vst [vmem:[#allocation39_spill] sm:$0xff] %v2386_v0  ;;  %v870_v28 = vmax.f32 %v868_v60, %v2386_v0 }
 0x217   : > { %v834_v8 = vmax.f32 %v832_v4, %v833_v20  ;;  %v2389_v4 = vsub.s32 %v883_v14, %v885_v52  ;;  %v2394_v20 = vsub.s32 0, %v885_v52 }
 0x218   : > { %v871_v38 = vmax.f32 %v869_v12, %v870_v28  ;;  %v2396_v28 = vsub.s32 1, %v885_v52 }
 0x219   : > { %v835_v34 = vrot.slane %v834_v8, 4  ;;  %2954 = vst [vmem:[#allocation40_spill] sm:$0xff] %v2389_v4 }
 0x21a   : > { %v872_v32 = vrot.slane %v871_v38, 4 }
 0x21b   : > { %v836_v16 = vmax.f32 %v834_v8, %v835_v34  ;;  %v803_v8 = vld [vmem:[#allocation2] sm:$0x3] }
 0x21c   : > { %v873_v30 = vmax.f32 %v871_v38, %v872_v32  ;;  %v1766_v38 = vld [vmem:[%s2174_s18 + $0x4] ss:$8 sps:$4 sm:$0xff]   ;;  %v2980_v52 = vld [vmem:[#allocation38_spill] sm:$0xff] }
 0x21d   : > { %v837_v22 = vrot.slane %v836_v16, 2  ;;  %1314 = vmatprep.mubr.bf16.mxu1 %v1766_v38 }
 0x21e   : > { %v874_v40 = vrot.slane %v873_v30, 2 }
 0x21f   : > { %v838_v48 = vmax.f32 %v836_v16, %v837_v22  ;;  %v2955_v22 = vmov 0 }
 0x220   : > { %v875_v18 = vmax.f32 %v873_v30, %v874_v40  ;;  %v2956_v22 = vsel %vm2398_vm2, 4294967295, %v2955_v22 }
 0x221   : > { %v839_v56 = vrot.slane %v838_v48, 1  ;;  %2957 = vst [vmem:[#allocation41_spill] sm:$0xff] %v2956_v22  ;;  %v2974_v22 = vld [vmem:[#allocation32_spill] sm:$0xff] }
 0x222   : > { %v876_v10 = vrot.slane %v875_v18, 1 }
 0x223   : > { %v840_v6 = vmax.f32 %v838_v48, %v839_v56 }
 0x224   : > { %v877_v60 = vmax.f32 %v875_v18, %v876_v10 }
 0x226   : > { %v880_v12 = vcombine.low %v840_v6, %v877_v60  ;;  %v2979_v60 = vld [vmem:[#allocation37_spill] sm:$0xff] }
 0x228   : > { %v887_v34 = vrot.slane %v880_v12, %v2389_v4  ;;  %v2976_v12 = vld [vmem:[#allocation34_spill] sm:$0xff] }
 0x22a   : > { %v894_v26 = vrot.slane %v887_v34, %v2389_v4  ;;  %v2977_v34 = vld [vmem:[#allocation35_spill] sm:$0xff] }
 0x22c   : > { %v896_v30 = vmax.f32 %v803_v8, %v894_v26  ;;  %v2959_v26 = vld [vmem:[#allocation17_spill] sm:$0xff] }
 0x22e   : > { %v897_v10 = vsub.f32 %v803_v8, %v896_v30  ;;  %v2403_v14 = vrot.slane %v896_v30, %v2394_v20  ;;  %v2406_v6 = vrot.slane %v896_v30, %v2396_v28  ;;  %1351 = vst.msk [vmem:[#allocation2] sm:$0x3] %vm2398_vm2, %v896_v30  ;;  %v2958_v8 = vld [vmem:[#allocation16_spill] sm:$0xff]  ;;  %v2960_v30 = vld [vmem:[#allocation18_spill] sm:$0xff] }
 0x230   : > { %v898_v40 = vmul.f32 1.442695, %v897_v10  ;;  %v2961_v10 = vld [vmem:[#allocation19_spill] sm:$0xff]  ;;  %v2981_v32 = vsub.f32 %v2197_v41, %v2403_v14  ;;  %v2982_v24 = vsub.f32 %v2199_v42, %v2406_v6  ;;  %v2983_v56 = vsub.f32 %v2201_v43, %v2403_v14 }
 0x231   : > { %v2984_v48 = vsub.f32 %v2203_v44, %v2406_v6  ;;  %v2985_v36 = vsub.f32 %v2205_v45, %v2403_v14  ;;  %v2986_v41 = vsub.f32 %v2209_v47, %v2406_v6  ;;  %v2988_v44 = vsub.f32 %v2217_v51, %v2406_v6 }
 0x232   : > { %v975_v4 = vmul.f32 1.442695, %v2981_v32  ;;  %v977_v16 = vmul.f32 1.442695, %v2982_v24  ;;  %1770 = vpow2.f32 %v898_v40  ;;  %v979_v38 = vmul.f32 1.442695, %v2983_v56 }
 0x233   : > { %v981_v18 = vmul.f32 1.442695, %v2984_v48  ;;  %v983_v0 = vmul.f32 1.442695, %v2985_v36  ;;  %v985_v42 = vmul.f32 1.442695, %v2986_v41  ;;  %v2987_v24 = vsub.f32 %v2213_v49, %v2403_v14 }
 0x234   : > { %1772 = vpow2.f32 %v975_v4  ;;  %v989_v48 = vmul.f32 1.442695, %v2988_v44  ;;  %v2989_v45 = vsub.f32 %v2221_v53, %v2403_v14  ;;  %v2990_v47 = vsub.f32 %v2224_v55, %v2406_v6 }
 0x235   : > { %1774 = vpow2.f32 %v977_v16  ;;  %v987_v43 = vmul.f32 1.442695, %v2987_v24  ;;  %v2991_v49 = vsub.f32 %v2227_v57, %v2403_v14  ;;  %v2992_v51 = vsub.f32 %v2230_v59, %v2406_v6 }
 0x236   : > { %1776 = vpow2.f32 %v979_v38  ;;  %v991_v4 = vmul.f32 1.442695, %v2989_v45  ;;  %v993_v56 = vmul.f32 1.442695, %v2990_v47  ;;  %v2993_v53 = vsub.f32 %v2233_v61, %v2403_v14 }
 0x237   : > { %1778 = vpow2.f32 %v981_v18  ;;  %v995_v16 = vmul.f32 1.442695, %v2991_v49  ;;  %v997_v18 = vmul.f32 1.442695, %v2992_v51  ;;  %v2994_v55 = vsub.f32 %v2236_v63, %v2406_v6 }
 0x238   : > { %1780 = vpow2.f32 %v983_v0  ;;  %v999_v0 = vmul.f32 1.442695, %v2993_v53  ;;  %v2995_v57 = vsub.f32 %v2239_v1, %v2403_v14  ;;  %v2996_v41 = vsub.f32 %v2242_v3, %v2406_v6 }
 0x239   : > { %1782 = vpow2.f32 %v985_v42  ;;  %v1001_v36 = vmul.f32 1.442695, %v2994_v55  ;;  %v2997_v24 = vsub.f32 %v2245_v5, %v2403_v14  ;;  %v2998_v44 = vsub.f32 %v2248_v7, %v2406_v6 }
 0x23a   : > { %1784 = vpow2.f32 %v987_v43  ;;  %v1003_v38 = vmul.f32 1.442695, %v2995_v57  ;;  %v1005_v61 = vmul.f32 1.442695, %v2996_v41  ;;  %v2999_v45 = vsub.f32 %v2251_v9, %v2403_v14 }
 0x23b   : > { %1786 = vpow2.f32 %v989_v48  ;;  %v1007_v43 = vmul.f32 1.442695, %v2997_v24  ;;  %v1009_v48 = vmul.f32 1.442695, %v2998_v44  ;;  %v3000_v47 = vsub.f32 %v2254_v11, %v2406_v6 }
 0x23c   : > { %1788 = vpow2.f32 %v991_v4  ;;  %v2577_v32 = vpop.eup %1770  ;;  %v1011_v3 = vmul.f32 1.442695, %v2999_v45  ;;  %v3001_v49 = vsub.f32 %v2257_v13, %v2403_v14  ;;  %v3002_v51 = vsub.f32 %v2260_v15, %v2406_v6 }
 0x23d   : > { %1790 = vpow2.f32 %v993_v56  ;;  %v1013_v5 = vmul.f32 1.442695, %v3000_v47  ;;  %v3003_v9 = vsub.f32 %v2263_v17, %v2403_v14  ;;  %v3004_v11 = vsub.f32 %v2266_v19, %v2406_v6 }
 0x23e   : > { %v1773_v40 = vpop.eup %1772  ;;  %1792 = vpow2.f32 %v995_v16  ;;  %v1015_v7 = vmul.f32 1.442695, %v3001_v49  ;;  %v3005_v13 = vsub.f32 %v2269_v21, %v2403_v14  ;;  %v3006_v57 = vsub.f32 %v2272_v23, %v2406_v6 }
 0x23f   : > { %v1775_v59 = vpop.eup %1774  ;;  %1794 = vpow2.f32 %v997_v18  ;;  %v1017_v18 = vmul.f32 1.442695, %v3002_v51  ;;  %v1019_v53 = vmul.f32 1.442695, %v3003_v9  ;;  %v1021_v55 = vmul.f32 1.442695, %v3004_v11 }
 0x240   : > { %v1777_v42 = vpop.eup %1776  ;;  %1796 = vpow2.f32 %v999_v0  ;;  %v1025_v15 = vmul.f32 1.442695, %v3006_v57  ;;  %v3007_v17 = vsub.f32 %v2275_v25, %v2403_v14 }
 0x241   : > { %v1779_v63 = vpop.eup %1778  ;;  %1798 = vpow2.f32 %v1001_v36  ;;  %v1023_v36 = vmul.f32 1.442695, %v3005_v13  ;;  %v1105_v19 = vadd.f32 %v1777_v42, %v1773_v40  ;;  %v3011_v13 = vsub.f32 %v2287_v33, %v2403_v14 }
 0x242   : > { %v2594_v1 = vpop.eup %1780  ;;  %1800 = vpow2.f32 %v1003_v38  ;;  %v1027_v41 = vmul.f32 1.442695, %v3007_v17  ;;  %v1142_v44 = vadd.f32 %v1779_v63, %v1775_v59  ;;  %v1231_v21 = vpack.c.bf16 %v1779_v63, %v1775_v59 }
 0x243   : > { %v1783_v4 = vpop.eup %1782  ;;  %1802 = vpow2.f32 %v1005_v61  ;;  %v3008_v61 = vsub.f32 %v2278_v27, %v2406_v6  ;;  %v1106_v23 = vadd.f32 %v2594_v1, %v1105_v19  ;;  %v2639_v59 = vrot.slane %v2577_v32, %v2396_v28 }
 0x244   : > { %v1785_v56 = vpop.eup %1784  ;;  %1804 = vpow2.f32 %v1007_v43  ;;  %v1143_v25 = vadd.f32 %v1783_v4, %v1142_v44  ;;  %1282 = vmatprep.subr.bf16.mxu1 %v1231_v21  ;;  %v3009_v63 = vsub.f32 %v2281_v29, %v2403_v14  ;;  %v1035_v29 = vmul.f32 1.442695, %v3011_v13 }
 0x245   : > { %v1787_v16 = vpop.eup %1786  ;;  %1806 = vpow2.f32 %v1009_v48  ;;  %v1029_v24 = vmul.f32 1.442695, %v3008_v61  ;;  %v1230_v48 = vpack.c.bf16 %v1777_v42, %v1773_v40  ;;  %v1232_v47 = vpack.c.bf16 %v1785_v56, %v2594_v1 }
 0x246   : > { %v2611_v0 = vpop.eup %1788  ;;  %1808 = vpow2.f32 %v1011_v3  ;;  %v1233_v3 = vpack.c.bf16 %v1787_v16, %v1783_v4  ;;  %v2635_v40 = vrot.slane %v2577_v32, %v2394_v20  ;;  %v1031_v1 = vmul.f32 1.442695, %v3009_v63 }
 0x247   : > { %v1791_v38 = vpop.eup %1790  ;;  %1810 = vpow2.f32 %v1013_v5  ;;  %1283 = vmatpush1.bf16.msra.mxu1 %v1230_v48  ;;  %v1144_v4 = vadd.f32 %v1787_v16, %v1143_v25  ;;  %v3013_v61 = vsub.f32 %v2293_v37, %v2403_v14  ;;  %v3015_v21 = vsub.f32 %v2299_v46, %v2403_v14 }
 0x248   : > { %v1793_v43 = vpop.eup %1792  ;;  %1812 = vpow2.f32 %v1015_v7  ;;  %v1107_v7 = vadd.f32 %v1785_v56, %v1106_v23  ;;  %1284 = vmatprep.subr.bf16.mxu1 %v1233_v3  ;;  %v3010_v56 = vsub.f32 %v2284_v31, %v2406_v6  ;;  %v3016_v3 = vsub.f32 %v2302_v50, %v2406_v6 }
 0x249   : > { %v1795_v45 = vpop.eup %1794  ;;  %1814 = vpow2.f32 %v1017_v18  ;;  %v1234_v49 = vpack.c.bf16 %v1793_v43, %v2611_v0  ;;  %v1043_v37 = vmul.f32 1.442695, %v3015_v21  ;;  %v3017_v25 = vsub.f32 %v2305_v54, %v2403_v14  ;;  %v3027_v21 = vld [vmem:[#allocation21_spill] sm:$0xff] }
 0x24a   : > { %v2630_v5 = vpop.eup %1796  ;;  %1816 = vpow2.f32 %v1019_v53  ;;  %v1235_v27 = vpack.c.bf16 %v1795_v45, %v1791_v38  ;;  %v1033_v9 = vmul.f32 1.442695, %v3010_v56  ;;  %v1108_v53 = vadd.f32 %v2611_v0, %v1107_v7 }
 0x24b   : > { %v1799_v51 = vpop.eup %1798  ;;  %1818 = vpow2.f32 %v1021_v55  ;;  %1285 = vmatpush1.bf16.msra.mxu1 %v1232_v47  ;;  %v3021_v13 = vsub.f32 %v2958_v8, %v2403_v14 }
 0x24c   : > { %v1801_v42 = vpop.eup %1800  ;;  %1820 = vpow2.f32 %v1023_v36  ;;  %v1145_v36 = vadd.f32 %v1791_v38, %v1144_v4  ;;  %v1109_v17 = vadd.f32 %v1793_v43, %v1108_v53  ;;  %1286 = vmatprep.subr.bf16.mxu1 %v1235_v27  ;;  %v3014_v38 = vsub.f32 %v2296_v39, %v2406_v6 }
 0x24d   : > { %v1803_v18 = vpop.eup %1802  ;;  %1822 = vpow2.f32 %v1025_v15  ;;  %v1236_v11 = vpack.c.bf16 %v1801_v42, %v2630_v5  ;;  %v3012_v15 = vsub.f32 %v2290_v35, %v2406_v6  ;;  %v1045_v39 = vmul.f32 1.442695, %v3016_v3 }
 0x24e   : > { %v2649_v55 = vpop.eup %1804  ;;  %1824 = vpow2.f32 %v1027_v41  ;;  %v1237_v16 = vpack.c.bf16 %v1803_v18, %v1799_v51  ;;  %v1039_v41 = vmul.f32 1.442695, %v3013_v61  ;;  %v1146_v19 = vadd.f32 %v1795_v45, %v1145_v36 }
 0x24f   : > { %v1807_v57 = vpop.eup %1806  ;;  %1826 = vpow2.f32 %v1029_v24  ;;  %v1037_v31 = vmul.f32 1.442695, %v3012_v15  ;;  %v1041_v24 = vmul.f32 1.442695, %v3014_v38  ;;  %v1110_v44 = vadd.f32 %v2630_v5, %v1109_v17  ;;  %1287 = vmatpush1.bf16.msra.mxu1 %v1234_v49  ;;  %v3025_v38 = vld [vmem:[#allocation20_spill] sm:$0xff] }
 0x250   : > { %v1809_v0 = vpop.eup %1808  ;;  %1828 = vpow2.f32 %v1031_v1  ;;  %v1147_v48 = vadd.f32 %v1799_v51, %v1146_v19  ;;  %v1047_v27 = vmul.f32 1.442695, %v3017_v25  ;;  %1288 = vmatprep.subr.bf16.mxu1 %v1237_v16  ;;  %v3018_v51 = vsub.f32 %v2308_v58, %v2406_v6 }
 0x251   : > { %v1811_v33 = vpop.eup %1810  ;;  %1830 = vpow2.f32 %v1033_v9  ;;  %v1238_v35 = vpack.c.bf16 %v1809_v0, %v2649_v55  ;;  %v1111_v47 = vadd.f32 %v1801_v42, %v1110_v44  ;;  %v3019_v49 = vsub.f32 %v2311_v62, %v2403_v14 }
 0x252   : > { %v2665_v43 = vpop.eup %1812  ;;  %1832 = vpow2.f32 %v1035_v29  ;;  %v1239_v45 = vpack.c.bf16 %v1811_v33, %v1807_v57  ;;  %v1148_v7 = vadd.f32 %v1803_v18, %v1147_v48  ;;  %v1049_v63 = vmul.f32 1.442695, %v3018_v51 }
 0x253   : > { %v1815_v23 = vpop.eup %1814  ;;  %1834 = vpow2.f32 %v1037_v31  ;;  %v1112_v1 = vadd.f32 %v2649_v55, %v1111_v47  ;;  %v1051_v54 = vmul.f32 1.442695, %v3019_v49  ;;  %v3020_v9 = vsub.f32 %v2314_v2, %v2406_v6  ;;  %1289 = vmatpush1.bf16.msra.mxu1 %v1236_v11 }
 0x254   : > { %v1817_v5 = vpop.eup %1816  ;;  %1836 = vpow2.f32 %v1039_v41  ;;  %v1149_v4 = vadd.f32 %v1807_v57, %v1148_v7  ;;  %v1055_v29 = vmul.f32 1.442695, %v3021_v13  ;;  %1290 = vmatprep.subr.bf16.mxu1 %v1239_v45  ;;  %v3022_v16 = vsub.f32 %v2959_v26, %v2406_v6 }
 0x255   : > { %v1819_v46 = vpop.eup %1818  ;;  %1838 = vpow2.f32 %v1041_v24  ;;  %v1240_v50 = vpack.c.bf16 %v1817_v5, %v2665_v43  ;;  %v1053_v58 = vmul.f32 1.442695, %v3020_v9  ;;  %v1113_v53 = vadd.f32 %v1809_v0, %v1112_v1  ;;  %v3033_v1 = vld [vmem:[#allocation24_spill] sm:$0xff] }
 0x256   : > { %v2681_v42 = vpop.eup %1820  ;;  %1840 = vpow2.f32 %v1043_v37  ;;  %v1241_v18 = vpack.c.bf16 %v1819_v46, %v1815_v23  ;;  %v1150_v36 = vadd.f32 %v1811_v33, %v1149_v4  ;;  %v1057_v57 = vmul.f32 1.442695, %v3022_v16 }
 0x257   : > { %v1823_v56 = vpop.eup %1822  ;;  %1842 = vpow2.f32 %v1045_v39  ;;  %v1114_v15 = vadd.f32 %v2665_v43, %v1113_v53  ;;  %v3023_v11 = vsub.f32 %v2960_v30, %v2403_v14  ;;  %v3024_v41 = vsub.f32 %v2961_v10, %v2406_v6  ;;  %1291 = vmatpush1.bf16.msra.mxu1 %v1238_v35  ;;  %v3029_v35 = vld [vmem:[#allocation22_spill] sm:$0xff] }
 0x258   : > { %v1825_v55 = vpop.eup %1824  ;;  %1844 = vpow2.f32 %v1047_v27  ;;  %v1151_v17 = vadd.f32 %v1815_v23, %v1150_v36  ;;  %v3026_v24 = vsub.f32 %v3025_v38, %v2403_v14  ;;  %1292 = vmatprep.subr.bf16.mxu1 %v1241_v18  ;;  %v3028_v37 = vsub.f32 %v3027_v21, %v2406_v6  ;;  %v3031_v27 = vld [vmem:[#allocation23_spill] sm:$0xff]  ;;  %v3035_v18 = vld [vmem:[#allocation25_spill] sm:$0xff] }
 0x259   : > { %v1827_v62 = vpop.eup %1826  ;;  %1846 = vpow2.f32 %v1049_v63  ;;  %v1242_v2 = vpack.c.bf16 %v1825_v55, %v2681_v42  ;;  %v1059_v8 = vmul.f32 1.442695, %v3023_v11  ;;  %v1061_v26 = vmul.f32 1.442695, %v3024_v41 }
 0x25a   : > { %v2697_v31 = vpop.eup %1828  ;;  %1848 = vpow2.f32 %v1051_v54  ;;  %v1243_v0 = vpack.c.bf16 %v1827_v62, %v1823_v56  ;;  %v1115_v19 = vadd.f32 %v1817_v5, %v1114_v15  ;;  %v1063_v44 = vmul.f32 1.442695, %v3026_v24 }
 0x25b   : > { %v1831_v61 = vpop.eup %1830  ;;  %1850 = vpow2.f32 %v1053_v58  ;;  %v1152_v43 = vadd.f32 %v1819_v46, %v1151_v17  ;;  %v1065_v48 = vmul.f32 1.442695, %v3028_v37  ;;  %v3030_v3 = vsub.f32 %v3029_v35, %v2403_v14  ;;  %1293 = vmatpush1.bf16.msra.mxu1 %v1240_v50  ;;  %v3037_v50 = vld [vmem:[#allocation26_spill] sm:$0xff]  ;;  %v3041_v17 = vld [vmem:[#allocation28_spill] sm:$0xff]  ;;  %v3047_v35 = vld [vmem:[#allocation31_spill] sm:$0xff] }
 0x25c   : > { %v1833_v33 = vpop.eup %1832  ;;  %1852 = vpow2.f32 %v1055_v29  ;;  %v1116_v45 = vadd.f32 %v2681_v42, %v1115_v19  ;;  %v3032_v7 = vsub.f32 %v3031_v27, %v2406_v6  ;;  %v3034_v42 = vsub.f32 %v3033_v1, %v2403_v14  ;;  %1294 = vmatprep.subr.bf16.mxu1 %v1243_v0 }
 0x25d   : > { %v1835_v30 = vpop.eup %1834  ;;  %1854 = vpow2.f32 %v1057_v57  ;;  %v1244_v10 = vpack.c.bf16 %v1833_v33, %v2697_v31  ;;  %v1067_v39 = vmul.f32 1.442695, %v3030_v3  ;;  %v1153_v47 = vadd.f32 %v1823_v56, %v1152_v43  ;;  %v3039_v57 = vld [vmem:[#allocation27_spill] sm:$0xff] }
 0x25e   : > { %v2713_v23 = vpop.eup %1836  ;;  %1856 = vpow2.f32 %v1059_v8  ;;  %v1245_v5 = vpack.c.bf16 %v1835_v30, %v1831_v61  ;;  %v1069_v46 = vmul.f32 1.442695, %v3032_v7  ;;  %v1117_v51 = vadd.f32 %v1825_v55, %v1116_v45 }
 0x25f   : > { %v1839_v25 = vpop.eup %1838  ;;  %1858 = vpow2.f32 %v1061_v26  ;;  %v1071_v49 = vmul.f32 1.442695, %v3034_v42  ;;  %v1154_v54 = vadd.f32 %v1827_v62, %v1153_v47  ;;  %v3036_v56 = vsub.f32 %v3035_v18, %v2406_v6  ;;  %1295 = vmatpush1.bf16.msra.mxu1 %v1242_v2  ;;  %v3045_v2 = vld [vmem:[#allocation30_spill] sm:$0xff] }
 0x260   : > { %v1841_v63 = vpop.eup %1840  ;;  %1860 = vpow2.f32 %v1063_v44  ;;  %v1118_v58 = vadd.f32 %v2697_v31, %v1117_v51  ;;  %v3038_v13 = vsub.f32 %v3037_v50, %v2403_v14  ;;  %v3040_v15 = vsub.f32 %v3039_v57, %v2406_v6  ;;  %1296 = vmatprep.subr.bf16.mxu1 %v1245_v5 }
 0x261   : > { %v1843_v4 = vpop.eup %1842  ;;  %1862 = vpow2.f32 %v1065_v48  ;;  %v1073_v9 = vmul.f32 1.442695, %v3036_v56  ;;  %v1246_v53 = vpack.c.bf16 %v1841_v63, %v2713_v23  ;;  %v1155_v36 = vadd.f32 %v1831_v61, %v1154_v54  ;;  %v3043_v61 = vld [vmem:[#allocation29_spill] sm:$0xff] }
 0x262   : > { %v2729_v55 = vpop.eup %1844  ;;  %1864 = vpow2.f32 %v1067_v39  ;;  %v1075_v29 = vmul.f32 1.442695, %v3038_v13  ;;  %v1247_v62 = vpack.c.bf16 %v1843_v4, %v1839_v25  ;;  %v1077_v11 = vmul.f32 1.442695, %v3040_v15 }
 0x263   : > { %v1847_v16 = vpop.eup %1846  ;;  %1866 = vpow2.f32 %v1069_v46  ;;  %v1119_v8 = vadd.f32 %v1833_v33, %v1118_v58  ;;  %v3042_v0 = vsub.f32 %v3041_v17, %v2403_v14  ;;  %v1156_v26 = vadd.f32 %v1835_v30, %v1155_v36  ;;  %1297 = vmatpush1.bf16.msra.mxu1 %v1244_v10 }
 0x264   : > { %v1849_v31 = vpop.eup %1848  ;;  %1868 = vpow2.f32 %v1071_v49  ;;  %v3044_v38 = vsub.f32 %v3043_v61, %v2406_v6  ;;  %v3046_v21 = vsub.f32 %v3045_v2, %v2403_v14  ;;  %v3048_v3 = vsub.f32 %v3047_v35, %v2406_v6  ;;  %1298 = vmatprep.subr.bf16.mxu1 %v1247_v62 }
 0x265   : > { %v1079_v41 = vmul.f32 1.442695, %v3042_v0  ;;  %v1851_v19 = vpop.eup %1850  ;;  %1870 = vpow2.f32 %v1073_v9  ;;  %v1120_v44 = vadd.f32 %v2713_v23, %v1119_v8  ;;  %v1248_v43 = vpack.c.bf16 %v1849_v31, %v2729_v55  ;;  %v3058_v0 = vld [vmem:[#allocation39_spill] sm:$0xff] }
 0x266   : > { %v1081_v24 = vmul.f32 1.442695, %v3044_v38  ;;  %v2745_v33 = vpop.eup %1852  ;;  %1872 = vpow2.f32 %v1075_v29  ;;  %v1083_v37 = vmul.f32 1.442695, %v3046_v21  ;;  %v1157_v48 = vadd.f32 %v1839_v25, %v1156_v26  ;;  %v3050_v25 = vld [vmem:[#allocation33_spill] sm:$0xff] }
 0x267   : > { %v1249_v30 = vpack.c.bf16 %v1851_v19, %v1847_v16  ;;  %v1855_v45 = vpop.eup %1854  ;;  %1874 = vpow2.f32 %v1077_v11  ;;  %v1085_v39 = vmul.f32 1.442695, %v3048_v3  ;;  %v1121_v47 = vadd.f32 %v1841_v63, %v1120_v44  ;;  %1299 = vmatpush1.bf16.msra.mxu1 %v1246_v53 }
 0x268   : > { %v1857_v23 = vpop.eup %1856  ;;  %1876 = vpow2.f32 %v1079_v41  ;;  %v3049_v5 = vsub.f32 %v2974_v22, %v2403_v14  ;;  %v1158_v7 = vadd.f32 %v1843_v4, %v1157_v48  ;;  %v3051_v51 = vsub.f32 %v3050_v25, %v2406_v6 }
 0x269   : > { %v1859_v46 = vpop.eup %1858  ;;  %1878 = vpow2.f32 %v1081_v24  ;;  %v1122_v42 = vadd.f32 %v2729_v55, %v1121_v47  ;;  %v1250_v49 = vpack.c.bf16 %v1857_v23, %v2745_v33  ;;  %v3052_v10 = vsub.f32 %v2976_v12, %v2403_v14  ;;  %v3054_v55 = vld [vmem:[#allocation36_spill] sm:$0xff]  ;;  %1300 = vmatprep.subr.bf16.mxu1 %v1249_v30 }
 0x26a   : > { %v1087_v27 = vmul.f32 1.442695, %v3049_v5  ;;  %v1089_v1 = vmul.f32 1.442695, %v3051_v51  ;;  %v1861_v63 = vpop.eup %1860  ;;  %1880 = vpow2.f32 %v1083_v37  ;;  %v1159_v22 = vadd.f32 %v1847_v16, %v1158_v7 }
 0x26b   : > { %v1091_v54 = vmul.f32 1.442695, %v3052_v10  ;;  %v1251_v18 = vpack.c.bf16 %v1859_v46, %v1855_v45  ;;  %v1863_v4 = vpop.eup %1862  ;;  %1882 = vpow2.f32 %v1085_v39  ;;  %v3053_v56 = vsub.f32 %v2977_v34, %v2406_v6  ;;  %1301 = vmatpush1.bf16.msra.mxu1 %v1248_v43 }
 0x26c   : > { %v1123_v58 = vadd.f32 %v1849_v31, %v1122_v42  ;;  %v1865_v50 = vpop.eup %1864  ;;  %1884 = vpow2.f32 %v1087_v27  ;;  %v3055_v13 = vsub.f32 %v3054_v55, %v2403_v14  ;;  %v1160_v36 = vadd.f32 %v1851_v19, %v1159_v22 }
 0x26d   : > { %v1093_v9 = vmul.f32 1.442695, %v3053_v56  ;;  %v1867_v12 = vpop.eup %1866  ;;  %1886 = vpow2.f32 %v1089_v1  ;;  %v3056_v62 = vsub.f32 %v2979_v60, %v2406_v6  ;;  %v1252_v34 = vpack.c.bf16 %v1865_v50, %v1861_v63  ;;  %1302 = vmatprep.subr.bf16.mxu1 %v1251_v18 }
 0x26e   : > { %v1095_v29 = vmul.f32 1.442695, %v3055_v13  ;;  %v1124_v57 = vadd.f32 %v2745_v33, %v1123_v58  ;;  %v1869_v15 = vpop.eup %1868  ;;  %1888 = vpow2.f32 %v1091_v54  ;;  %v3057_v53 = vsub.f32 %v2980_v52, %v2403_v14 }
 0x26f   : > { %v1097_v16 = vmul.f32 1.442695, %v3056_v62  ;;  %v1161_v8 = vadd.f32 %v1855_v45, %v1160_v36  ;;  %v1253_v31 = vpack.c.bf16 %v1867_v12, %v1863_v4  ;;  %v1871_v17 = vpop.eup %1870  ;;  %1890 = vpow2.f32 %v1093_v9  ;;  %1303 = vmatpush1.bf16.msra.mxu1 %v1250_v49  ;;  %v1764_v62 = vld [vmem:[%s2174_s18] ss:$8 sps:$4 sm:$0xff]  }
 0x270   : > { %v1099_v11 = vmul.f32 1.442695, %v3057_v53  ;;  %v3059_v41 = vsub.f32 %v3058_v0, %v2406_v6  ;;  %v1125_v19 = vadd.f32 %v1857_v23, %v1124_v57  ;;  %v1873_v60 = vpop.eup %1872  ;;  %1892 = vpow2.f32 %v1095_v29  ;;  %v1767_v57 = vld [vmem:[%s2174_s18 + $0x14] ss:$8 sps:$4 sm:$0xff]   ;;  %v1769_v0 = vld [vmem:[%s2174_s18 + $0x10] ss:$8 sps:$4 sm:$0xff]  }
 0x271   : > { %v1162_v61 = vadd.f32 %v1859_v46, %v1161_v8  ;;  %v1875_v38 = vpop.eup %1874  ;;  %1894 = vpow2.f32 %v1097_v16  ;;  %v1254_v44 = vpack.c.bf16 %v1873_v60, %v1869_v15  ;;  %1304 = vmatprep.subr.bf16.mxu1 %v1253_v31 }
 0x272   : > { %v1101_v26 = vmul.f32 1.442695, %v3059_v41  ;;  %v1126_v24 = vadd.f32 %v1861_v63, %v1125_v19  ;;  %v1877_v14 = vpop.eup %1876  ;;  %1896 = vpow2.f32 %v1099_v11  ;;  %v1255_v33 = vpack.c.bf16 %v1875_v38, %v1871_v17 }
 0x273   : > { %v1163_v52 = vadd.f32 %v1863_v4, %v1162_v61  ;;  %v1879_v2 = vpop.eup %1878  ;;  %1305 = vmatpush1.bf16.msra.mxu1 %v1252_v34  ;;  %v3060_v61 = vld [vmem:[#allocation40_spill] sm:$0xff] }
 0x274   : > { %1898 = vpow2.f32 %v1101_v26  ;;  %v1127_v21 = vadd.f32 %v1865_v50, %v1126_v24  ;;  %v1881_v6 = vpop.eup %1880  ;;  %1306 = vmatprep.subr.bf16.mxu1 %v1255_v33  ;;  %v1203_v33 = vld [vmem:[#allocation4] sm:$0xff] }
 0x275   : > { %v1164_v37 = vadd.f32 %v1867_v12, %v1163_v52  ;;  %v1883_v43 = vpop.eup %1882  ;;  %v1256_v30 = vpack.c.bf16 %v1881_v6, %v1877_v14  ;;  %v1401_v52 = vld [vmem:[%s2176_s6 + $0x28] sm:$0xff] (!%p1657_p3) }
 0x276   : > { %v1128_v48 = vadd.f32 %v1869_v15, %v1127_v21  ;;  %v1885_v45 = vpop.eup %1884  ;;  %v1257_v3 = vpack.c.bf16 %v1883_v43, %v1879_v2  ;;  %v1205_v21 = vld [vmem:[#allocation4 + $0x10] sm:$0xff] }
 0x277   : > { %v1165_v35 = vadd.f32 %v1871_v17, %v1164_v37  ;;  %v1887_v39 = vpop.eup %1886  ;;  %1307 = vmatpush1.bf16.msra.mxu1 %v1254_v44  ;;  %v1206_v37 = vld [vmem:[#allocation4 + $0x18] sm:$0xff] }
 0x278   : > { %v1129_v47 = vadd.f32 %v1873_v60, %v1128_v48  ;;  %v1889_v23 = vpop.eup %1888  ;;  %1308 = vmatprep.subr.bf16.mxu1 %v1257_v3  ;;  %v1103_v60 = vld [vmem:[#allocation3] sm:$0x3] }
 0x279   : > { %v1166_v5 = vadd.f32 %v1875_v38, %v1165_v35  ;;  %v1891_v27 = vpop.eup %1890  ;;  %v1258_v46 = vpack.c.bf16 %v1889_v23, %v1885_v45  ;;  %v1104_v24 = vmul.f32 %v2577_v32, %v1103_v60  ;;  %v1224_v35 = vmul.f32 %v2635_v40, %v1205_v21  ;;  %v1399_v60 = vld [vmem:[%s2176_s6 + $0x18] sm:$0xff] (!%p1657_p3) }
 0x27a   : > { %v1130_v7 = vadd.f32 %v1877_v14, %v1129_v47  ;;  %v1893_v25 = vpop.eup %1892  ;;  %v1259_v1 = vpack.c.bf16 %v1891_v27, %v1887_v39 }
 0x27b   : > { %v1167_v51 = vadd.f32 %v1879_v2, %v1166_v5  ;;  %v1895_v42 = vpop.eup %1894  ;;  %1309 = vmatpush1.bf16.msra.mxu1 %v1256_v30  ;;  %v1204_v2 = vld [vmem:[#allocation4 + $0x8] sm:$0xff] }
 0x27c   : > { %v1131_v49 = vadd.f32 %v1881_v6, %v1130_v7  ;;  %v1897_v63 = vpop.eup %1896  ;;  %1310 = vmatprep.subr.bf16.mxu1 %v1259_v1  ;;  %v1222_v6 = vmul.f32 %v2635_v40, %v1203_v33  ;;  %v1223_v48 = vmul.f32 %v2639_v59, %v1204_v2  ;;  %v1208_v7 = vld [vmem:[#allocation4 + $0x28] sm:$0xff]  ;;  %v1402_v33 = vld [vmem:[%s2176_s6 + $0x30] sm:$0xff] (!%p1657_p3)  ;;  %v1403_v2 = vld [vmem:[%s2176_s6 + $0x38] sm:$0xff] (!%p1657_p3) }
 0x27d   : > { %v1168_v10 = vadd.f32 %v1883_v43, %v1167_v51  ;;  %v1260_v18 = vpack.c.bf16 %v1897_v63, %v1893_v25  ;;  %v1210_v51 = vld [vmem:[#allocation4 + $0x38] sm:$0xff] }
 0x27e   : > { %v1899_v54 = vpop.eup %1898  ;;  %v1132_v22 = vadd.f32 %v1885_v45, %v1131_v49 }
 0x27f   : > { %v1169_v4 = vadd.f32 %v1887_v39, %v1168_v10  ;;  %v1261_v56 = vpack.c.bf16 %v1899_v54, %v1895_v42  ;;  %1311 = vmatpush1.bf16.msra.mxu1 %v1258_v46  ;;  %v1225_v39 = vmul.f32 %v2639_v59, %v1206_v37  ;;  %v1209_v46 = vld [vmem:[#allocation4 + $0x30] sm:$0xff] }
 0x280   : > { %v1133_v9 = vadd.f32 %v1889_v23, %v1132_v22  ;;  %v1228_v10 = vmul.f32 %v2635_v40, %v1209_v46 }
 0x281   : > { %v1170_v58 = vadd.f32 %v1891_v27, %v1169_v4  ;;  %1312 = vmatprep.subr.bf16.mxu1 %v1261_v56  ;;  %v1207_v27 = vld [vmem:[#allocation4 + $0x20] sm:$0xff] }
 0x282   : > { %v1134_v50 = vadd.f32 %v1893_v25, %v1133_v9  ;;  %v1226_v25 = vmul.f32 %v2635_v40, %v1207_v27 }
 0x283   : > { %v1171_v55 = vadd.f32 %v1895_v42, %v1170_v58  ;;  %1313 = vmatpush1.bf16.msra.mxu1 %v1260_v18  ;;  %v1227_v42 = vmul.f32 %v2639_v59, %v1208_v7  ;;  %v1229_v18 = vmul.f32 %v2639_v59, %v1210_v51  ;;  %v1358_v58 = vld [vmem:[#allocation5] sm:$0x1] (!%p1657_p3) }
 0x284   : > { %v1135_v13 = vadd.f32 %v1897_v63, %v1134_v50  ;;  %1664 = vpush (!%p1657_p3), %v1358_v58 }
 0x285   : > { %v1172_v29 = vadd.f32 %v1899_v54, %v1171_v55 }
 0x286   : > { %v1136_v36 = vrot.slane %v1135_v13, 4  ;;  %1315 = vmatmul.mubr.bf16.vlgmr.msra.gmra.mrb[0].mxu1 %v1764_v62 }
 0x287   : > { %v1173_v12 = vrot.slane %v1172_v29, 4  ;;  %1324 = vmatprep.mubr.bf16.mxu1 %v1767_v57 }
 0x288   : > { %v1137_v16 = vadd.f32 %v1136_v36, %v1135_v13 }
 0x289   : > { %v1174_v34 = vadd.f32 %v1173_v12, %v1172_v29 }
 0x28a   : > { %v1138_v15 = vrot.slane %v1137_v16, 2 }
 0x28b   : > { %v1175_v53 = vrot.slane %v1174_v34, 2 }
 0x28c   : > { %v1139_v11 = vadd.f32 %v1138_v15, %v1137_v16 }
 0x28d   : > { %v1176_v8 = vadd.f32 %v1175_v53, %v1174_v34 }
 0x28e   : > { %v1140_v31 = vrot.slane %v1139_v11, 1  ;;  %1325 = vmatmul.mubr.bf16.gmra.mrb[4].mxu1 %v1769_v0  ;;  %v1396_v0 = vld [vmem:[%s2176_s6] sm:$0xff] (!%p1657_p3) }
 0x28f   : > { %v1177_v17 = vrot.slane %v1176_v8, 1 }
 0x290   : > { %v1141_v41 = vadd.f32 %v1140_v31, %v1139_v11 }
 0x291   : > { %v1178_v26 = vadd.f32 %v1177_v17, %v1176_v8 }
 0x293   : > { %v1181_v19 = vcombine.low %v1141_v41, %v1178_v26  ;;  %v1397_v41 = vld [vmem:[%s2176_s6 + $0x8] sm:$0xff] (!%p1657_p3) }
 0x295   : > { %v1188_v38 = vrot.slane %v1181_v19, %v3060_v61  ;;  %v1398_v19 = vld [vmem:[%s2176_s6 + $0x10] sm:$0xff] (!%p1657_p3) }
 0x297   : > { %v1195_v44 = vrot.slane %v1188_v38, %v3060_v61  ;;  %v1400_v61 = vld [vmem:[%s2176_s6 + $0x20] sm:$0xff] (!%p1657_p3) }
 0x299   : > { %v1197_v14 = vadd.f32 %v1195_v44, %v1104_v24 }
 0x29b   : > { %1202 = vst.msk [vmem:[#allocation3] sm:$0x3] %vm2398_vm2, %v1197_v14 }
 0x2a2   : > { %v1356_v50 = vld [vmem:[#allocation3] sm:$0x3] (!%p1657_p3) }
 0x2a3   : > { %1900 = vrcp.f32 (!%p1657_p3), %v1356_v50 }
 0x2ad   : > { %v1901_v55 = vpop.eup (!%p1657_p3), %1900 }
 0x2ae   : > { %v1372_v29 = vrot.slane (!%p1657_p3), %v1901_v55, %v2394_v20  ;;  %v1376_v59 = vrot.slane (!%p1657_p3), %v1901_v55, %v2396_v28 }
 0x2b5   : > { %s1665_s20 = spop (!%p1657_p3), %1664 }
 0x2b6   : > { %v1387_v26 = vstv (!%p1657_p3), %s1665_s20 }
 0x359   : > { %v1316_v43 = vpop.f32.mrb[0].mxu1 }
 0x35a   : > { %v1335_v30 = vadd.f32 %v1316_v43, %v1222_v6  ;;  %v1318_v45 = vpop.f32.mrb[1].mxu1 }
 0x35b   : > { %v1336_v32 = vadd.f32 %v1318_v45, %v1223_v48  ;;  %v1320_v3 = vpop.f32.mrb[2].mxu1 }
 0x35c   : > { %1343 = vst [vmem:[#allocation4] sm:$0xff] %v1335_v30  ;;  %v1337_v47 = vadd.f32 %v1320_v3, %v1224_v35  ;;  %v1322_v23 = vpop.f32.mrb[3].mxu1 }
 0x35d   : > { %1344 = vst [vmem:[#allocation4 + $0x8] sm:$0xff] %v1336_v32  ;;  %v1338_v5 = vadd.f32 %v1322_v23, %v1225_v39 }
 0x35e   : > { %1345 = vst [vmem:[#allocation4 + $0x10] sm:$0xff] %v1337_v47 }
 0x35f   : > { %1346 = vst [vmem:[#allocation4 + $0x18] sm:$0xff] %v1338_v5 }
 0x361   : > { %v1326_v1 = vpop.f32.mrb[4].mxu1  ;;  %1355 = sbr.rel (%p1657_p3) target bundleno = 886 (0x376), region = 185 }
 0x362   : > { %v1339_v49 = vadd.f32 %v1326_v1, %v1226_v25  ;;  %v1328_v63 = vpop.f32.mrb[5].mxu1 }
 0x363   : > { %v1340_v54 = vadd.f32 %v1328_v63, %v1227_v42  ;;  %v1330_v22 = vpop.f32.mrb[6].mxu1  ;;  %v1360_v40 = vld [vmem:[#allocation4] sm:$0xff] (!%p1657_p3) }
 0x364   : > { %1347 = vst [vmem:[#allocation4 + $0x20] sm:$0xff] %v1339_v49  ;;  %v1341_v4 = vadd.f32 %v1330_v22, %v1228_v10  ;;  %v1332_v56 = vpop.f32.mrb[7].mxu1  ;;  %v1361_v13 = vld [vmem:[#allocation4 + $0x8] sm:$0xff] (!%p1657_p3)  ;;  %v1379_v15 = vmul.f32 (!%p1657_p3), %v1372_v29, %v1360_v40 }
 0x365   : > { %1348 = vst [vmem:[#allocation4 + $0x28] sm:$0xff] %v1340_v54  ;;  %v1342_v9 = vadd.f32 %v1332_v56, %v1229_v18  ;;  %v1362_v36 = vld [vmem:[#allocation4 + $0x10] sm:$0xff] (!%p1657_p3)  ;;  %v1380_v53 = vmul.f32 (!%p1657_p3), %v1376_v59, %v1361_v13 }
 0x366   : > { %1349 = vst [vmem:[#allocation4 + $0x30] sm:$0xff] %v1341_v4  ;;  %v1363_v12 = vld [vmem:[#allocation4 + $0x18] sm:$0xff] (!%p1657_p3)  ;;  %v1381_v11 = vmul.f32 (!%p1657_p3), %v1372_v29, %v1362_v36  ;;  %v1388_v38 = vmul.f32 (!%p1657_p3), %v1387_v26, %v1379_v15 }
 0x367   : > { %1350 = vst [vmem:[#allocation4 + $0x38] sm:$0xff] %v1342_v9  ;;  %v1382_v8 = vmul.f32 (!%p1657_p3), %v1376_v59, %v1363_v12  ;;  %v1389_v24 = vmul.f32 (!%p1657_p3), %v1387_v26, %v1380_v53 }
 0x368   : > { %v1390_v44 = vmul.f32 %v1387_v26, %v1381_v11  ;;  %v1404_v48 = vadd.f32 %v1396_v0, %v1388_v38 }
 0x369   : > { %v1391_v14 = vmul.f32 %v1387_v26, %v1382_v8  ;;  %v1405_v30 = vadd.f32 %v1397_v41, %v1389_v24 }
 0x36a   : > { %v1406_v45 = vadd.f32 %v1398_v19, %v1390_v44  ;;  %1412 = vst [vmem:[%s2178_s11] sm:$0xff] %v1404_v48 }
 0x36b   : > { %v1364_v62 = vld [vmem:[#allocation4 + $0x20] sm:$0xff]  ;;  %v1407_v35 = vadd.f32 %v1399_v60, %v1391_v14  ;;  %1413 = vst [vmem:[%s2178_s11 + $0x8] sm:$0xff] %v1405_v30 }
 0x36c   : > { %v1365_v16 = vld [vmem:[#allocation4 + $0x28] sm:$0xff]  ;;  %v1383_v31 = vmul.f32 %v1372_v29, %v1364_v62  ;;  %1414 = vst [vmem:[%s2178_s11 + $0x10] sm:$0xff] %v1406_v45 }
 0x36d   : > { %v1366_v57 = vld [vmem:[#allocation4 + $0x30] sm:$0xff]  ;;  %v1384_v20 = vmul.f32 %v1376_v59, %v1365_v16  ;;  %1415 = vst [vmem:[%s2178_s11 + $0x18] sm:$0xff] %v1407_v35 }
 0x36e   : > { %v1367_v34 = vld [vmem:[#allocation4 + $0x38] sm:$0xff]  ;;  %v1385_v28 = vmul.f32 %v1372_v29, %v1366_v57  ;;  %v1392_v21 = vmul.f32 %v1387_v26, %v1383_v31 }
 0x36f   : > { %v1386_v17 = vmul.f32 %v1376_v59, %v1367_v34  ;;  %v1393_v6 = vmul.f32 %v1387_v26, %v1384_v20 }
 0x370   : > { %v1394_v37 = vmul.f32 %v1387_v26, %v1385_v28  ;;  %v1408_v32 = vadd.f32 %v1400_v61, %v1392_v21 }
 0x371   : > { %v1395_v43 = vmul.f32 %v1387_v26, %v1386_v17  ;;  %v1409_v3 = vadd.f32 %v1401_v52, %v1393_v6 }
 0x372   : > { %v1410_v39 = vadd.f32 %v1402_v33, %v1394_v37  ;;  %1416 = vst [vmem:[%s2178_s11 + $0x20] sm:$0xff] %v1408_v32 }
 0x373   : > { %v1411_v47 = vadd.f32 %v1403_v2, %v1395_v43  ;;  %1417 = vst [vmem:[%s2178_s11 + $0x28] sm:$0xff] %v1409_v3 }
 0x374   : > { %1418 = vst [vmem:[%s2178_s11 + $0x30] sm:$0xff] %v1410_v39 }
 0x375   : > { %1419 = vst [vmem:[%s2178_s11 + $0x38] sm:$0xff] %v1411_v47 }
 0x376 PF: > { %1426 = sbr.rel (!%p2118_p9) target bundleno = 895 (0x37f), region = 189  ;;  %s1659_s22 = sshll.u32 (%p2118_p9), %s1968_s25, 1  ;;  %v1444_v23 = vld [vmem:[%s2178_s11] sm:$0xff] (%p2118_p9)  ;;  %v1446_v5 = vld [vmem:[%s2178_s11 + $0x8] sm:$0xff] (%p2118_p9)  ;;  %v1448_v27 = vld [vmem:[%s2178_s11 + $0x10] sm:$0xff] (%p2118_p9) }
 0x377   : > { %s1660_s24 = sshll.u32 (%p2118_p9), %s1972_s26, 4  ;;  %v1450_v7 = vld [vmem:[%s2178_s11 + $0x18] sm:$0xff] (%p2118_p9) }
 0x378   : > { %s1429_s19 = sadd.s32 (%p2118_p9), %s1660_s24, %s1659_s22 }
 0x379   : > { %v1452_v46 = vld [vmem:[%s2178_s11 + $0x20] sm:$0xff] (%p2118_p9)  ;;  %s1661_s14 = sshll.u32 (%p2118_p9), %s1429_s19, 3 }
 0x37a   : > { %v1454_v25 = vld [vmem:[%s2178_s11 + $0x28] sm:$0xff] (%p2118_p9)  ;;  %s1431_s9 = scalar_lea.vmem (%p2118_p9), %s2868_s5, %s1661_s14 }
 0x37b   : > { %v1456_v51 = vld [vmem:[%s2178_s11 + $0x30] sm:$0xff] (%p2118_p9)  ;;  %1445 = vst [vmem:[%s1431_s9] sm:$0xff] (%p2118_p9), %v1444_v23  ;;  %1447 = vst [vmem:[%s1431_s9 + $0x8] sm:$0xff] (%p2118_p9), %v1446_v5 }
 0x37c   : > { %v1458_v1 = vld [vmem:[%s2178_s11 + $0x38] sm:$0xff] (%p2118_p9)  ;;  %1449 = vst [vmem:[%s1431_s9 + $0x20] sm:$0xff] (%p2118_p9), %v1448_v27  ;;  %1451 = vst [vmem:[%s1431_s9 + $0x28] sm:$0xff] (%p2118_p9), %v1450_v7 }
 0x37d   : > { %1453 = vst [vmem:[%s1431_s9 + $0x40] sm:$0xff] %v1452_v46  ;;  %1455 = vst [vmem:[%s1431_s9 + $0x48] sm:$0xff] %v1454_v25 }
 0x37e   : > { %1457 = vst [vmem:[%s1431_s9 + $0x60] sm:$0xff] %v1456_v51  ;;  %1459 = vst [vmem:[%s1431_s9 + $0x68] sm:$0xff] %v1458_v1 }
 0x37f PF: > { %s17_s29 = sadd.s32 1, %s1988_s29   ;;  %s3062_s25 = sld [smem:[#allocation15_spill]] }
 0x380   : > { %p14_p4 = scmp.ge.s32.totalorder %s17_s29, 10   ;;  %s3063_s26 = sld [smem:[#allocation14_spill]] }
 0x381   : > { %s3064_s8 = sld [smem:[#allocation11_spill]]  ;;  %s3065_s15 = sld [smem:[#allocation12_spill]] }
 0x382   : > { %s3066_s7 = sld [smem:[#allocation13_spill]]  ;;  %s3067_s20 = smov %s1952_s21 }
 0x383   : > { %s3069_s22 = smov %s1960_s23  ;;  %s3071_s24 = smov %s1976_s27 }
 0x384   :  { %16 = sbr.rel (!%p14_p4) target bundleno = 9 (0x9), region = 267 }
 0x385   : > { %s3068_s21 = smov %s3062_s25  ;;  %s3072_s25 = smov %s1980_s28 }
 0x386   : > { %s3070_s23 = smov %s3063_s26  ;;  %s3073_s26 = smov %s1984_s4 }
 0x387   : > { %s3074_s27 = smov %s3064_s8  ;;  %s3075_s28 = smov %s3065_s15 }
 0x388   : > { %s3076_s4 = smov %s3066_s7 }

</bundles_post_ra>
